<compile_context>
chip_gen: v6e
topology: v6e:2x2x1
jax: 0.10.0
libtpu: 0.0.40
codegen_flags: <defaults>
</compile_context>

<pallas_src>
import jax
import jax.numpy as jnp
from jax import lax
from jax.experimental import pallas as pl
from jax.experimental.pallas import tpu as pltpu


# --------------------------------------------------------------------------
# Gaussian window / band-matrix construction (plain JAX glue)
# --------------------------------------------------------------------------
def _round_up(v: int, m: int) -> int:
    return (v + m - 1) // m * m


def _gaussian_window_1d(window_size: int, sigma: float) -> jnp.ndarray:
    half = window_size // 2
    xs = jnp.arange(-half, half + 1, dtype=jnp.float32)
    w = jnp.exp(-0.5 * xs * xs / (sigma * sigma))
    return w / jnp.sum(w)


def _band_matrix(w1d: jnp.ndarray, in_len: int, out_len: int) -> jnp.ndarray:
    # M[r, c] = w1d[r - c] if 0 <= r - c < window_size else 0 ; shape (in_len, out_len)
    ws = w1d.shape[0]
    r = jnp.arange(in_len)[:, None]
    c = jnp.arange(out_len)[None, :]
    d = r - c
    mask = (d >= 0) & (d < ws)
    return jnp.where(mask, w1d[jnp.clip(d, 0, ws - 1)], 0.0).astype(jnp.float32)


def _pick_images_per_block(nc: int, w: int) -> int:
    """Images packed along the lane axis per grid step.

    Prefer the smallest divisor b of nc such that b*w is a multiple of 128
    (dense MXU tiles, bounded VMEM, lets the grid pipeline).  When w does not
    admit a 128-aligned packing, fall back to a single full-width block
    (full-dim lane blocks are exempt from the 128-divisibility rule).
    """
    for b in range(1, nc + 1):
        if nc % b == 0 and (b * w) % 128 == 0 and b * w <= 512:
            return b
    return nc


# --------------------------------------------------------------------------
# Pallas kernel: fused 5-map Gaussian filtering (2 matmuls) + SSIM/CS maps +
# per-block partial sums.
# --------------------------------------------------------------------------
def _make_ssim_kernel(C1: float, C2: float, Hout: int, Ho8: int):
    def kernel(btbd_ref, abd_ref, x_ref, y_ref, ssim_out_ref, cs_out_ref):
        xp = x_ref[...]                                  # (Hp8, B*W) lane-packed images
        yp = y_ref[...]

        # Stack the five maps along sublanes -> one (5*Hp8, B*W) operand, so the
        # Gaussian filtering is exactly two MXU matmuls instead of ten tiny ones.
        u = jnp.concatenate([xp, yp, xp * xp, yp * yp, xp * yp], axis=0)
        t = jnp.dot(btbd_ref[...], u, preferred_element_type=jnp.float32)   # (5*Ho8, B*W)
        r = jnp.dot(t, abd_ref[...], preferred_element_type=jnp.float32)    # (5*Ho8, B*Wout)

        mu_x = r[0 * Ho8:1 * Ho8]
        mu_y = r[1 * Ho8:2 * Ho8]
        e_xx = r[2 * Ho8:3 * Ho8]
        e_yy = r[3 * Ho8:4 * Ho8]
        e_xy = r[4 * Ho8:5 * Ho8]

        sigma2_x = e_xx - mu_x * mu_x
        sigma2_y = e_yy - mu_y * mu_y
        sigma_xy = e_xy - mu_x * mu_y

        a1 = 2.0 * mu_x * mu_y + C1
        a2 = 2.0 * sigma_xy + C2
        b1 = mu_x * mu_x + mu_y * mu_y + C1
        b2 = sigma2_x + sigma2_y + C2
        lmap = a1 / b1
        cs = a2 / b2
        ssim = lmap * cs

        if Ho8 != Hout:
            # Mask the sublane padding rows (their SSIM is exactly 1, must not count).
            rows = lax.broadcasted_iota(jnp.int32, ssim.shape, 0)
            valid = (rows < Hout).astype(jnp.float32)
            ssim = ssim * valid
            cs = cs * valid

        ssim_out_ref[...] = jnp.broadcast_to(jnp.sum(ssim, keepdims=True),
                                             ssim_out_ref.shape)
        cs_out_ref[...] = jnp.broadcast_to(jnp.sum(cs, keepdims=True),
                                           cs_out_ref.shape)

    return kernel


def _ssim_means(x, y, w1d, pad, window_size, C1, C2):
    """Returns (ssim.mean(), cs.mean()) for one scale, computed in Pallas."""
    N, C, H, W = x.shape
    NC = N * C
    Hp, Wp = H + 2 * pad, W + 2 * pad
    Hout = Hp - window_size + 1
    Wout = Wp - window_size + 1
    assert Hout >= 1 and Wout >= 1, "image too small for this window/padding"

    # Band matrices with the zero padding folded in (no padded image copies).
    bt = _band_matrix(w1d, Hp, Hout).T[:, pad:pad + H]      # (Hout, H)
    a = _band_matrix(w1d, Wp, Wout)[pad:pad + W, :]         # (W, Wout)

    # Align sublane dims to 8 so in-kernel concat/slices are tile aligned.
    Hp8 = _round_up(H, 8)
    Ho8 = _round_up(Hout, 8)
    bt = jnp.pad(bt, ((0, Ho8 - Hout), (0, Hp8 - H)))
    btbd = jnp.kron(jnp.eye(5, dtype=jnp.float32), bt)      # (5*Ho8, 5*Hp8)

    # Pack B images side-by-side on the lane axis; block-diagonal right matrix.
    B = _pick_images_per_block(NC, W)
    G = NC // B
    abd = jnp.kron(jnp.eye(B, dtype=jnp.float32), a)        # (B*W, B*Wout)

    def pack(img):
        p = img.astype(jnp.float32).reshape(NC, H, W)
        p = p.transpose(1, 0, 2).reshape(H, NC * W)          # (H, NC*W), lane-packed
        return jnp.pad(p, ((0, Hp8 - H), (0, 0)))
    xpk = pack(x)
    ypk = pack(y)

    kernel = _make_ssim_kernel(C1, C2, Hout, Ho8)
    ssim_part, cs_part = pl.pallas_call(
        kernel,
        out_shape=(jax.ShapeDtypeStruct((G * 8, 128), jnp.float32),
                   jax.ShapeDtypeStruct((G * 8, 128), jnp.float32)),
        grid_spec=pltpu.PrefetchScalarGridSpec(
            num_scalar_prefetch=0,
            grid=(G,),
            in_specs=[
                pl.BlockSpec((5 * Ho8, 5 * Hp8), lambda i: (0, 0)),   # btbd (constant)
                pl.BlockSpec((B * W, B * Wout), lambda i: (0, 0)),    # abd  (constant)
                pl.BlockSpec((Hp8, B * W), lambda i: (0, i)),         # x lane-block
                pl.BlockSpec((Hp8, B * W), lambda i: (0, i)),         # y lane-block
            ],
            out_specs=[
                pl.BlockSpec((8, 128), lambda i: (i, 0)),
                pl.BlockSpec((8, 128), lambda i: (i, 0)),
            ],
        ),
        compiler_params=pltpu.CompilerParams(
            dimension_semantics=("parallel",)),
    )(btbd, abd, xpk, ypk)

    count = jnp.float32(NC * Hout * Wout)
    ssim_mean = jnp.sum(ssim_part[::8, 0]) / count
    cs_mean = jnp.sum(cs_part[::8, 0]) / count
    return ssim_mean, cs_mean


# --------------------------------------------------------------------------
# avg_pool2d(kernel=2, stride=2, padding=[H%2, W%2], count_include_pad=True)
# Window grid starts at the top-left of the padded tensor, so for odd dims the
# bottom/right pad row is never visited: pad only on the top/left.
# --------------------------------------------------------------------------
def _avg_pool2(x):
    N, C, H, W = x.shape
    ph, pw = H % 2, W % 2
    xp = jnp.pad(x, ((0, 0), (0, 0), (ph, 0), (pw, 0)))
    H2 = (H + ph) // 2
    W2 = (W + pw) // 2
    return xp.reshape(N, C, H2, 2, W2, 2).mean(axis=(3, 5))


# --------------------------------------------------------------------------
# mssim_loss forward (matches the PyTorch module semantics)
# --------------------------------------------------------------------------
def mssim_loss_forward(x, y, *, window_size=11, sigma=1.5, K1=0.01, K2=0.03,
                       L=1, padding=None, loss_weight=1.0):
    assert x.shape == y.shape and x.ndim == 4
    C1 = (K1 * L) ** 2
    C2 = (K2 * L) ** 2
    pad = window_size // 2 if padding is None else padding
    w1d = _gaussian_window_1d(window_size, sigma)

    x = x.astype(jnp.float32)
    y = y.astype(jnp.float32)

    weights = (0.0448, 0.2856, 0.3001, 0.2363, 0.1333)
    ms_components = []
    for i, wgt in enumerate(weights):
        ssim_mean, cs_mean = _ssim_means(x, y, w1d, pad, window_size, C1, C2)
        if i == 4:
            ms_components.append(ssim_mean ** wgt)
        else:
            ms_components.append(cs_mean ** wgt)
            x = _avg_pool2(x)
            y = _avg_pool2(y)

    msssim = ms_components[0]
    for comp in ms_components[1:]:
        msssim = msssim * comp
    return loss_weight * (1.0 - msssim)


if __name__ == "__main__":
    key = jax.random.PRNGKey(0)
    kx, kn = jax.random.split(key)
    # N=2, C=3 (module default in_channels=3), H=W=16 -> scales 16,8,4,2,1
    x = jax.random.uniform(kx, (2, 3, 16, 16), dtype=jnp.float32)
    y = jnp.clip(x + 0.05 * jax.random.normal(kn, (2, 3, 16, 16), dtype=jnp.float32),
                 0.0, 1.0)

    loss_fn = jax.jit(lambda a, b: mssim_loss_forward(a, b))
    loss = jax.block_until_ready(loss_fn(x, y))
    assert loss.shape == () and bool(jnp.isfinite(loss))
    print("KERNEL_OK")
</pallas_src>

<mosaic_0001>
module attributes {stable_mosaic.version = 11 : i64} {
  func.func @kernel(%arg0: i32, %arg1: memref<80x80xf32, #tpu.memory_space<vmem>>, %arg2: memref<96x96xf32, #tpu.memory_space<vmem>>, %arg3: memref<16x96xf32, #tpu.memory_space<vmem>>, %arg4: memref<16x96xf32, #tpu.memory_space<vmem>>, %arg5: memref<8x128xf32, #tpu.memory_space<vmem>>, %arg6: memref<8x128xf32, #tpu.memory_space<vmem>>) attributes {dimension_semantics = [#tpu.dimension_semantics<parallel>], iteration_bounds = array<i64: 1>, scalar_prefetch = 0 : i64, scratch_operands = 0 : i64, tpu.core_type = #tpu.core_type<tc>, window_params = [{pipeline_mode = #tpu.pipeline_mode<synchronous>, transform_indices = @transform_0, window_bounds = array<i64: 80, 80>}, {pipeline_mode = #tpu.pipeline_mode<synchronous>, transform_indices = @transform_1, window_bounds = array<i64: 96, 96>}, {transform_indices = @transform_2, window_bounds = array<i64: 16, 96>}, {transform_indices = @transform_3, window_bounds = array<i64: 16, 96>}, {transform_indices = @transform_4, window_bounds = array<i64: 8, 128>}, {transform_indices = @transform_5, window_bounds = array<i64: 8, 128>}]} {
    %c0 = arith.constant 0 : index
    %c0_0 = arith.constant 0 : index
    %0 = vector.load %arg3[%c0, %c0_0] : memref<16x96xf32, #tpu.memory_space<vmem>>, vector<16x96xf32>
    %c0_1 = arith.constant 0 : index
    %c0_2 = arith.constant 0 : index
    %1 = vector.load %arg4[%c0_1, %c0_2] : memref<16x96xf32, #tpu.memory_space<vmem>>, vector<16x96xf32>
    %2 = arith.mulf %0, %0 : vector<16x96xf32>
    %3 = arith.mulf %1, %1 : vector<16x96xf32>
    %4 = arith.mulf %0, %1 : vector<16x96xf32>
    %5 = tpu.concatenate %0, %1, %2, %3, %4 in 0 : vector<16x96xf32>, vector<16x96xf32>, vector<16x96xf32>, vector<16x96xf32>, vector<16x96xf32> -> vector<80x96xf32>
    %c0_3 = arith.constant 0 : index
    %c0_4 = arith.constant 0 : index
    %6 = vector.load %arg1[%c0_3, %c0_4] : memref<80x80xf32, #tpu.memory_space<vmem>>, vector<80x80xf32>
    %cst = arith.constant dense<0.000000e+00> : vector<80x96xf32>
    %7 = tpu.matmul %6, %5, %cst {dimension_numbers = #tpu.dot_dimension_numbers<[1], [0], [0], [1], [0, 0, 1, 1], [], []>} : vector<80x80xf32>, vector<80x96xf32>, vector<80x96xf32> -> vector<80x96xf32>
    %c0_5 = arith.constant 0 : index
    %c0_6 = arith.constant 0 : index
    %8 = vector.load %arg2[%c0_5, %c0_6] : memref<96x96xf32, #tpu.memory_space<vmem>>, vector<96x96xf32>
    %cst_7 = arith.constant dense<0.000000e+00> : vector<80x96xf32>
    %9 = tpu.matmul %7, %8, %cst_7 {dimension_numbers = #tpu.dot_dimension_numbers<[1], [0], [0], [1], [0, 0, 1, 1], [], []>} : vector<80x96xf32>, vector<96x96xf32>, vector<80x96xf32> -> vector<80x96xf32>
    %10 = vector.extract_strided_slice %9 {offsets = [0, 0], sizes = [16, 96], strides = [1, 1]} : vector<80x96xf32> to vector<16x96xf32>
    %11 = vector.extract_strided_slice %9 {offsets = [16, 0], sizes = [16, 96], strides = [1, 1]} : vector<80x96xf32> to vector<16x96xf32>
    %12 = vector.extract_strided_slice %9 {offsets = [32, 0], sizes = [16, 96], strides = [1, 1]} : vector<80x96xf32> to vector<16x96xf32>
    %13 = vector.extract_strided_slice %9 {offsets = [48, 0], sizes = [16, 96], strides = [1, 1]} : vector<80x96xf32> to vector<16x96xf32>
    %14 = vector.extract_strided_slice %9 {offsets = [64, 0], sizes = [16, 96], strides = [1, 1]} : vector<80x96xf32> to vector<16x96xf32>
    %15 = arith.mulf %10, %10 : vector<16x96xf32>
    %16 = arith.subf %12, %15 : vector<16x96xf32>
    %17 = arith.mulf %11, %11 : vector<16x96xf32>
    %18 = arith.subf %13, %17 : vector<16x96xf32>
    %19 = arith.mulf %10, %11 : vector<16x96xf32>
    %20 = arith.subf %14, %19 : vector<16x96xf32>
    %cst_8 = arith.constant 2.000000e+00 : f32
    %21 = vector.broadcast %cst_8 : f32 to vector<16x96xf32>
    %22 = arith.mulf %21, %10 : vector<16x96xf32>
    %23 = arith.mulf %22, %11 : vector<16x96xf32>
    %cst_9 = arith.constant 9.99999974E-5 : f32
    %24 = vector.broadcast %cst_9 : f32 to vector<16x96xf32>
    %25 = arith.addf %23, %24 : vector<16x96xf32>
    %cst_10 = arith.constant 2.000000e+00 : f32
    %26 = vector.broadcast %cst_10 : f32 to vector<16x96xf32>
    %27 = arith.mulf %26, %20 : vector<16x96xf32>
    %cst_11 = arith.constant 8.99999984E-4 : f32
    %28 = vector.broadcast %cst_11 : f32 to vector<16x96xf32>
    %29 = arith.addf %27, %28 : vector<16x96xf32>
    %30 = arith.mulf %10, %10 : vector<16x96xf32>
    %31 = arith.mulf %11, %11 : vector<16x96xf32>
    %32 = arith.addf %30, %31 : vector<16x96xf32>
    %cst_12 = arith.constant 9.99999974E-5 : f32
    %33 = vector.broadcast %cst_12 : f32 to vector<16x96xf32>
    %34 = arith.addf %32, %33 : vector<16x96xf32>
    %35 = arith.addf %16, %18 : vector<16x96xf32>
    %cst_13 = arith.constant 8.99999984E-4 : f32
    %36 = vector.broadcast %cst_13 : f32 to vector<16x96xf32>
    %37 = arith.addf %35, %36 : vector<16x96xf32>
    %38 = arith.divf %25, %34 : vector<16x96xf32>
    %39 = arith.divf %29, %37 : vector<16x96xf32>
    %40 = arith.mulf %38, %39 : vector<16x96xf32>
    %41 = vector.shape_cast %40 : vector<16x96xf32> to vector<1x16x96xf32>
    %cst_14 = arith.constant dense<0.000000e+00> : vector<1xf32>
    %42 = vector.multi_reduction <add>, %41, %cst_14 [1, 2] : vector<1x16x96xf32> to vector<1xf32>
    %43 = vector.shape_cast %42 : vector<1xf32> to vector<1x1x1xf32>
    %44 = vector.extract %43[0, 0, 0] : f32 from vector<1x1x1xf32>
    %45 = vector.broadcast %44 : f32 to vector<1x1xf32>
    %46 = vector.shape_cast %45 : vector<1x1xf32> to vector<1x1xf32>
    %47 = vector.broadcast %46 : vector<1x1xf32> to vector<8x128xf32>
    %c0_15 = arith.constant 0 : index
    %c0_16 = arith.constant 0 : index
    %48 = vector.load %arg5[%c0_15, %c0_16] : memref<8x128xf32, #tpu.memory_space<vmem>>, vector<8x128xf32>
    tpu.vector_store %arg5[%c0_15, %c0_16], %47 {strides = array<i32>} : memref<8x128xf32, #tpu.memory_space<vmem>>, vector<8x128xf32>,
    %49 = vector.shape_cast %39 : vector<16x96xf32> to vector<1x16x96xf32>
    %cst_17 = arith.constant dense<0.000000e+00> : vector<1xf32>
    %50 = vector.multi_reduction <add>, %49, %cst_17 [1, 2] : vector<1x16x96xf32> to vector<1xf32>
    %51 = vector.shape_cast %50 : vector<1xf32> to vector<1x1x1xf32>
    %52 = vector.extract %51[0, 0, 0] : f32 from vector<1x1x1xf32>
    %53 = vector.broadcast %52 : f32 to vector<1x1xf32>
    %54 = vector.shape_cast %53 : vector<1x1xf32> to vector<1x1xf32>
    %55 = vector.broadcast %54 : vector<1x1xf32> to vector<8x128xf32>
    %c0_18 = arith.constant 0 : index
    %c0_19 = arith.constant 0 : index
    %56 = vector.load %arg6[%c0_18, %c0_19] : memref<8x128xf32, #tpu.memory_space<vmem>>, vector<8x128xf32>
    tpu.vector_store %arg6[%c0_18, %c0_19], %55 {strides = array<i32>} : memref<8x128xf32, #tpu.memory_space<vmem>>, vector<8x128xf32>,
    return
  }
  func.func @transform_0(%arg0: i32) -> (i32, i32) {
    %c0_i32 = arith.constant 0 : i32
    %c0_i32_0 = arith.constant 0 : i32
    %c0_i32_1 = arith.constant 0 : i32
    return %c0_i32, %c0_i32_0 : i32, i32
  }
  func.func @transform_1(%arg0: i32) -> (i32, i32) {
    %c0_i32 = arith.constant 0 : i32
    %c0_i32_0 = arith.constant 0 : i32
    %c0_i32_1 = arith.constant 0 : i32
    return %c0_i32, %c0_i32_0 : i32, i32
  }
  func.func @transform_2(%arg0: i32) -> (i32, i32) {
    %c0_i32 = arith.constant 0 : i32
    %c0_i32_0 = arith.constant 0 : i32
    return %c0_i32, %arg0 : i32, i32
  }
  func.func @transform_3(%arg0: i32) -> (i32, i32) {
    %c0_i32 = arith.constant 0 : i32
    %c0_i32_0 = arith.constant 0 : i32
    return %c0_i32, %arg0 : i32, i32
  }
  func.func @transform_4(%arg0: i32) -> (i32, i32) {
    %c0_i32 = arith.constant 0 : i32
    %c0_i32_0 = arith.constant 0 : i32
    return %arg0, %c0_i32 : i32, i32
  }
  func.func @transform_5(%arg0: i32) -> (i32, i32) {
    %c0_i32 = arith.constant 0 : i32
    %c0_i32_0 = arith.constant 0 : i32
    return %arg0, %c0_i32 : i32, i32
  }
}

module attributes {stable_mosaic.version = 11 : i64} {
  func.func @kernel(%arg0: i32, %arg1: memref<40x40xf32, #tpu.memory_space<vmem>>, %arg2: memref<6x6xf32, #tpu.memory_space<vmem>>, %arg3: memref<8x6xf32, #tpu.memory_space<vmem>>, %arg4: memref<8x6xf32, #tpu.memory_space<vmem>>, %arg5: memref<8x128xf32, #tpu.memory_space<vmem>>, %arg6: memref<8x128xf32, #tpu.memory_space<vmem>>) attributes {dimension_semantics = [#tpu.dimension_semantics<parallel>], iteration_bounds = array<i64: 1>, scalar_prefetch = 0 : i64, scratch_operands = 0 : i64, tpu.core_type = #tpu.core_type<tc>, window_params = [{pipeline_mode = #tpu.pipeline_mode<synchronous>, transform_indices = @transform_0, window_bounds = array<i64: 40, 40>}, {pipeline_mode = #tpu.pipeline_mode<synchronous>, transform_indices = @transform_1, window_bounds = array<i64: 6, 6>}, {transform_indices = @transform_2, window_bounds = array<i64: 8, 6>}, {transform_indices = @transform_3, window_bounds = array<i64: 8, 6>}, {transform_indices = @transform_4, window_bounds = array<i64: 8, 128>}, {transform_indices = @transform_5, window_bounds = array<i64: 8, 128>}]} {
    %c0 = arith.constant 0 : index
    %c0_0 = arith.constant 0 : index
    %0 = vector.load %arg3[%c0, %c0_0] : memref<8x6xf32, #tpu.memory_space<vmem>>, vector<8x6xf32>
    %c0_1 = arith.constant 0 : index
    %c0_2 = arith.constant 0 : index
    %1 = vector.load %arg4[%c0_1, %c0_2] : memref<8x6xf32, #tpu.memory_space<vmem>>, vector<8x6xf32>
    %2 = arith.mulf %0, %0 : vector<8x6xf32>
    %3 = arith.mulf %1, %1 : vector<8x6xf32>
    %4 = arith.mulf %0, %1 : vector<8x6xf32>
    %5 = tpu.concatenate %0, %1, %2, %3, %4 in 0 : vector<8x6xf32>, vector<8x6xf32>, vector<8x6xf32>, vector<8x6xf32>, vector<8x6xf32> -> vector<40x6xf32>
    %c0_3 = arith.constant 0 : index
    %c0_4 = arith.constant 0 : index
    %6 = vector.load %arg1[%c0_3, %c0_4] : memref<40x40xf32, #tpu.memory_space<vmem>>, vector<40x40xf32>
    %cst = arith.constant dense<0.000000e+00> : vector<40x6xf32>
    %7 = tpu.matmul %6, %5, %cst {dimension_numbers = #tpu.dot_dimension_numbers<[1], [0], [0], [1], [0, 0, 1, 1], [], []>} : vector<40x40xf32>, vector<40x6xf32>, vector<40x6xf32> -> vector<40x6xf32>
    %c0_5 = arith.constant 0 : index
    %c0_6 = arith.constant 0 : index
    %8 = vector.load %arg2[%c0_5, %c0_6] : memref<6x6xf32, #tpu.memory_space<vmem>>, vector<6x6xf32>
    %cst_7 = arith.constant dense<0.000000e+00> : vector<40x6xf32>
    %9 = tpu.matmul %7, %8, %cst_7 {dimension_numbers = #tpu.dot_dimension_numbers<[1], [0], [0], [1], [0, 0, 1, 1], [], []>} : vector<40x6xf32>, vector<6x6xf32>, vector<40x6xf32> -> vector<40x6xf32>
    %10 = vector.extract_strided_slice %9 {offsets = [0, 0], sizes = [8, 6], strides = [1, 1]} : vector<40x6xf32> to vector<8x6xf32>
    %11 = vector.extract_strided_slice %9 {offsets = [8, 0], sizes = [8, 6], strides = [1, 1]} : vector<40x6xf32> to vector<8x6xf32>
    %12 = vector.extract_strided_slice %9 {offsets = [16, 0], sizes = [8, 6], strides = [1, 1]} : vector<40x6xf32> to vector<8x6xf32>
    %13 = vector.extract_strided_slice %9 {offsets = [24, 0], sizes = [8, 6], strides = [1, 1]} : vector<40x6xf32> to vector<8x6xf32>
    %14 = vector.extract_strided_slice %9 {offsets = [32, 0], sizes = [8, 6], strides = [1, 1]} : vector<40x6xf32> to vector<8x6xf32>
    %15 = arith.mulf %10, %10 : vector<8x6xf32>
    %16 = arith.subf %12, %15 : vector<8x6xf32>
    %17 = arith.mulf %11, %11 : vector<8x6xf32>
    %18 = arith.subf %13, %17 : vector<8x6xf32>
    %19 = arith.mulf %10, %11 : vector<8x6xf32>
    %20 = arith.subf %14, %19 : vector<8x6xf32>
    %cst_8 = arith.constant 2.000000e+00 : f32
    %21 = vector.broadcast %cst_8 : f32 to vector<8x6xf32>
    %22 = arith.mulf %21, %10 : vector<8x6xf32>
    %23 = arith.mulf %22, %11 : vector<8x6xf32>
    %cst_9 = arith.constant 9.99999974E-5 : f32
    %24 = vector.broadcast %cst_9 : f32 to vector<8x6xf32>
    %25 = arith.addf %23, %24 : vector<8x6xf32>
    %cst_10 = arith.constant 2.000000e+00 : f32
    %26 = vector.broadcast %cst_10 : f32 to vector<8x6xf32>
    %27 = arith.mulf %26, %20 : vector<8x6xf32>
    %cst_11 = arith.constant 8.99999984E-4 : f32
    %28 = vector.broadcast %cst_11 : f32 to vector<8x6xf32>
    %29 = arith.addf %27, %28 : vector<8x6xf32>
    %30 = arith.mulf %10, %10 : vector<8x6xf32>
    %31 = arith.mulf %11, %11 : vector<8x6xf32>
    %32 = arith.addf %30, %31 : vector<8x6xf32>
    %cst_12 = arith.constant 9.99999974E-5 : f32
    %33 = vector.broadcast %cst_12 : f32 to vector<8x6xf32>
    %34 = arith.addf %32, %33 : vector<8x6xf32>
    %35 = arith.addf %16, %18 : vector<8x6xf32>
    %cst_13 = arith.constant 8.99999984E-4 : f32
    %36 = vector.broadcast %cst_13 : f32 to vector<8x6xf32>
    %37 = arith.addf %35, %36 : vector<8x6xf32>
    %38 = arith.divf %25, %34 : vector<8x6xf32>
    %39 = arith.divf %29, %37 : vector<8x6xf32>
    %40 = arith.mulf %38, %39 : vector<8x6xf32>
    %41 = tpu.iota {dimensions = array<i32: 0>} : vector<8x6xi32>
    %c1_i32 = arith.constant 1 : i32
    %42 = vector.broadcast %c1_i32 : i32 to vector<8x6xi32>
    %43 = arith.cmpi slt, %41, %42 : vector<8x6xi32>
    %44 = arith.extui %43 : vector<8x6xi1> to vector<8x6xi32>
    %45 = arith.sitofp %44 : vector<8x6xi32> to vector<8x6xf32>
    %46 = arith.mulf %40, %45 : vector<8x6xf32>
    %47 = arith.mulf %39, %45 : vector<8x6xf32>
    %48 = vector.shape_cast %46 : vector<8x6xf32> to vector<1x8x6xf32>
    %cst_14 = arith.constant dense<0.000000e+00> : vector<1xf32>
    %49 = vector.multi_reduction <add>, %48, %cst_14 [1, 2] : vector<1x8x6xf32> to vector<1xf32>
    %50 = vector.shape_cast %49 : vector<1xf32> to vector<1x1x1xf32>
    %51 = vector.extract %50[0, 0, 0] : f32 from vector<1x1x1xf32>
    %52 = vector.broadcast %51 : f32 to vector<1x1xf32>
    %53 = vector.shape_cast %52 : vector<1x1xf32> to vector<1x1xf32>
    %54 = vector.broadcast %53 : vector<1x1xf32> to vector<8x128xf32>
    %c0_15 = arith.constant 0 : index
    %c0_16 = arith.constant 0 : index
    %55 = vector.load %arg5[%c0_15, %c0_16] : memref<8x128xf32, #tpu.memory_space<vmem>>, vector<8x128xf32>
    tpu.vector_store %arg5[%c0_15, %c0_16], %54 {strides = array<i32>} : memref<8x128xf32, #tpu.memory_space<vmem>>, vector<8x128xf32>,
    %56 = vector.shape_cast %47 : vector<8x6xf32> to vector<1x8x6xf32>
    %cst_17 = arith.constant dense<0.000000e+00> : vector<1xf32>
    %57 = vector.multi_reduction <add>, %56, %cst_17 [1, 2] : vector<1x8x6xf32> to vector<1xf32>
    %58 = vector.shape_cast %57 : vector<1xf32> to vector<1x1x1xf32>
    %59 = vector.extract %58[0, 0, 0] : f32 from vector<1x1x1xf32>
    %60 = vector.broadcast %59 : f32 to vector<1x1xf32>
    %61 = vector.shape_cast %60 : vector<1x1xf32> to vector<1x1xf32>
    %62 = vector.broadcast %61 : vector<1x1xf32> to vector<8x128xf32>
    %c0_18 = arith.constant 0 : index
    %c0_19 = arith.constant 0 : index
    %63 = vector.load %arg6[%c0_18, %c0_19] : memref<8x128xf32, #tpu.memory_space<vmem>>, vector<8x128xf32>
    tpu.vector_store %arg6[%c0_18, %c0_19], %62 {strides = array<i32>} : memref<8x128xf32, #tpu.memory_space<vmem>>, vector<8x128xf32>,
    return
  }
  func.func @transform_0(%arg0: i32) -> (i32, i32) {
    %c0_i32 = arith.constant 0 : i32
    %c0_i32_0 = arith.constant 0 : i32
    %c0_i32_1 = arith.constant 0 : i32
    return %c0_i32, %c0_i32_0 : i32, i32
  }
  func.func @transform_1(%arg0: i32) -> (i32, i32) {
    %c0_i32 = arith.constant 0 : i32
    %c0_i32_0 = arith.constant 0 : i32
    %c0_i32_1 = arith.constant 0 : i32
    return %c0_i32, %c0_i32_0 : i32, i32
  }
  func.func @transform_2(%arg0: i32) -> (i32, i32) {
    %c0_i32 = arith.constant 0 : i32
    %c0_i32_0 = arith.constant 0 : i32
    return %c0_i32, %arg0 : i32, i32
  }
  func.func @transform_3(%arg0: i32) -> (i32, i32) {
    %c0_i32 = arith.constant 0 : i32
    %c0_i32_0 = arith.constant 0 : i32
    return %c0_i32, %arg0 : i32, i32
  }
  func.func @transform_4(%arg0: i32) -> (i32, i32) {
    %c0_i32 = arith.constant 0 : i32
    %c0_i32_0 = arith.constant 0 : i32
    return %arg0, %c0_i32 : i32, i32
  }
  func.func @transform_5(%arg0: i32) -> (i32, i32) {
    %c0_i32 = arith.constant 0 : i32
    %c0_i32_0 = arith.constant 0 : i32
    return %arg0, %c0_i32 : i32, i32
  }
}

module attributes {stable_mosaic.version = 11 : i64} {
  func.func @kernel(%arg0: i32, %arg1: memref<40x40xf32, #tpu.memory_space<vmem>>, %arg2: memref<12x12xf32, #tpu.memory_space<vmem>>, %arg3: memref<8x12xf32, #tpu.memory_space<vmem>>, %arg4: memref<8x12xf32, #tpu.memory_space<vmem>>, %arg5: memref<8x128xf32, #tpu.memory_space<vmem>>, %arg6: memref<8x128xf32, #tpu.memory_space<vmem>>) attributes {dimension_semantics = [#tpu.dimension_semantics<parallel>], iteration_bounds = array<i64: 1>, scalar_prefetch = 0 : i64, scratch_operands = 0 : i64, tpu.core_type = #tpu.core_type<tc>, window_params = [{pipeline_mode = #tpu.pipeline_mode<synchronous>, transform_indices = @transform_0, window_bounds = array<i64: 40, 40>}, {pipeline_mode = #tpu.pipeline_mode<synchronous>, transform_indices = @transform_1, window_bounds = array<i64: 12, 12>}, {transform_indices = @transform_2, window_bounds = array<i64: 8, 12>}, {transform_indices = @transform_3, window_bounds = array<i64: 8, 12>}, {transform_indices = @transform_4, window_bounds = array<i64: 8, 128>}, {transform_indices = @transform_5, window_bounds = array<i64: 8, 128>}]} {
    %c0 = arith.constant 0 : index
    %c0_0 = arith.constant 0 : index
    %0 = vector.load %arg3[%c0, %c0_0] : memref<8x12xf32, #tpu.memory_space<vmem>>, vector<8x12xf32>
    %c0_1 = arith.constant 0 : index
    %c0_2 = arith.constant 0 : index
    %1 = vector.load %arg4[%c0_1, %c0_2] : memref<8x12xf32, #tpu.memory_space<vmem>>, vector<8x12xf32>
    %2 = arith.mulf %0, %0 : vector<8x12xf32>
    %3 = arith.mulf %1, %1 : vector<8x12xf32>
    %4 = arith.mulf %0, %1 : vector<8x12xf32>
    %5 = tpu.concatenate %0, %1, %2, %3, %4 in 0 : vector<8x12xf32>, vector<8x12xf32>, vector<8x12xf32>, vector<8x12xf32>, vector<8x12xf32> -> vector<40x12xf32>
    %c0_3 = arith.constant 0 : index
    %c0_4 = arith.constant 0 : index
    %6 = vector.load %arg1[%c0_3, %c0_4] : memref<40x40xf32, #tpu.memory_space<vmem>>, vector<40x40xf32>
    %cst = arith.constant dense<0.000000e+00> : vector<40x12xf32>
    %7 = tpu.matmul %6, %5, %cst {dimension_numbers = #tpu.dot_dimension_numbers<[1], [0], [0], [1], [0, 0, 1, 1], [], []>} : vector<40x40xf32>, vector<40x12xf32>, vector<40x12xf32> -> vector<40x12xf32>
    %c0_5 = arith.constant 0 : index
    %c0_6 = arith.constant 0 : index
    %8 = vector.load %arg2[%c0_5, %c0_6] : memref<12x12xf32, #tpu.memory_space<vmem>>, vector<12x12xf32>
    %cst_7 = arith.constant dense<0.000000e+00> : vector<40x12xf32>
    %9 = tpu.matmul %7, %8, %cst_7 {dimension_numbers = #tpu.dot_dimension_numbers<[1], [0], [0], [1], [0, 0, 1, 1], [], []>} : vector<40x12xf32>, vector<12x12xf32>, vector<40x12xf32> -> vector<40x12xf32>
    %10 = vector.extract_strided_slice %9 {offsets = [0, 0], sizes = [8, 12], strides = [1, 1]} : vector<40x12xf32> to vector<8x12xf32>
    %11 = vector.extract_strided_slice %9 {offsets = [8, 0], sizes = [8, 12], strides = [1, 1]} : vector<40x12xf32> to vector<8x12xf32>
    %12 = vector.extract_strided_slice %9 {offsets = [16, 0], sizes = [8, 12], strides = [1, 1]} : vector<40x12xf32> to vector<8x12xf32>
    %13 = vector.extract_strided_slice %9 {offsets = [24, 0], sizes = [8, 12], strides = [1, 1]} : vector<40x12xf32> to vector<8x12xf32>
    %14 = vector.extract_strided_slice %9 {offsets = [32, 0], sizes = [8, 12], strides = [1, 1]} : vector<40x12xf32> to vector<8x12xf32>
    %15 = arith.mulf %10, %10 : vector<8x12xf32>
    %16 = arith.subf %12, %15 : vector<8x12xf32>
    %17 = arith.mulf %11, %11 : vector<8x12xf32>
    %18 = arith.subf %13, %17 : vector<8x12xf32>
    %19 = arith.mulf %10, %11 : vector<8x12xf32>
    %20 = arith.subf %14, %19 : vector<8x12xf32>
    %cst_8 = arith.constant 2.000000e+00 : f32
    %21 = vector.broadcast %cst_8 : f32 to vector<8x12xf32>
    %22 = arith.mulf %21, %10 : vector<8x12xf32>
    %23 = arith.mulf %22, %11 : vector<8x12xf32>
    %cst_9 = arith.constant 9.99999974E-5 : f32
    %24 = vector.broadcast %cst_9 : f32 to vector<8x12xf32>
    %25 = arith.addf %23, %24 : vector<8x12xf32>
    %cst_10 = arith.constant 2.000000e+00 : f32
    %26 = vector.broadcast %cst_10 : f32 to vector<8x12xf32>
    %27 = arith.mulf %26, %20 : vector<8x12xf32>
    %cst_11 = arith.constant 8.99999984E-4 : f32
    %28 = vector.broadcast %cst_11 : f32 to vector<8x12xf32>
    %29 = arith.addf %27, %28 : vector<8x12xf32>
    %30 = arith.mulf %10, %10 : vector<8x12xf32>
    %31 = arith.mulf %11, %11 : vector<8x12xf32>
    %32 = arith.addf %30, %31 : vector<8x12xf32>
    %cst_12 = arith.constant 9.99999974E-5 : f32
    %33 = vector.broadcast %cst_12 : f32 to vector<8x12xf32>
    %34 = arith.addf %32, %33 : vector<8x12xf32>
    %35 = arith.addf %16, %18 : vector<8x12xf32>
    %cst_13 = arith.constant 8.99999984E-4 : f32
    %36 = vector.broadcast %cst_13 : f32 to vector<8x12xf32>
    %37 = arith.addf %35, %36 : vector<8x12xf32>
    %38 = arith.divf %25, %34 : vector<8x12xf32>
    %39 = arith.divf %29, %37 : vector<8x12xf32>
    %40 = arith.mulf %38, %39 : vector<8x12xf32>
    %41 = tpu.iota {dimensions = array<i32: 0>} : vector<8x12xi32>
    %c2_i32 = arith.constant 2 : i32
    %42 = vector.broadcast %c2_i32 : i32 to vector<8x12xi32>
    %43 = arith.cmpi slt, %41, %42 : vector<8x12xi32>
    %44 = arith.extui %43 : vector<8x12xi1> to vector<8x12xi32>
    %45 = arith.sitofp %44 : vector<8x12xi32> to vector<8x12xf32>
    %46 = arith.mulf %40, %45 : vector<8x12xf32>
    %47 = arith.mulf %39, %45 : vector<8x12xf32>
    %48 = vector.shape_cast %46 : vector<8x12xf32> to vector<1x8x12xf32>
    %cst_14 = arith.constant dense<0.000000e+00> : vector<1xf32>
    %49 = vector.multi_reduction <add>, %48, %cst_14 [1, 2] : vector<1x8x12xf32> to vector<1xf32>
    %50 = vector.shape_cast %49 : vector<1xf32> to vector<1x1x1xf32>
    %51 = vector.extract %50[0, 0, 0] : f32 from vector<1x1x1xf32>
    %52 = vector.broadcast %51 : f32 to vector<1x1xf32>
    %53 = vector.shape_cast %52 : vector<1x1xf32> to vector<1x1xf32>
    %54 = vector.broadcast %53 : vector<1x1xf32> to vector<8x128xf32>
    %c0_15 = arith.constant 0 : index
    %c0_16 = arith.constant 0 : index
    %55 = vector.load %arg5[%c0_15, %c0_16] : memref<8x128xf32, #tpu.memory_space<vmem>>, vector<8x128xf32>
    tpu.vector_store %arg5[%c0_15, %c0_16], %54 {strides = array<i32>} : memref<8x128xf32, #tpu.memory_space<vmem>>, vector<8x128xf32>,
    %56 = vector.shape_cast %47 : vector<8x12xf32> to vector<1x8x12xf32>
    %cst_17 = arith.constant dense<0.000000e+00> : vector<1xf32>
    %57 = vector.multi_reduction <add>, %56, %cst_17 [1, 2] : vector<1x8x12xf32> to vector<1xf32>
    %58 = vector.shape_cast %57 : vector<1xf32> to vector<1x1x1xf32>
    %59 = vector.extract %58[0, 0, 0] : f32 from vector<1x1x1xf32>
    %60 = vector.broadcast %59 : f32 to vector<1x1xf32>
    %61 = vector.shape_cast %60 : vector<1x1xf32> to vector<1x1xf32>
    %62 = vector.broadcast %61 : vector<1x1xf32> to vector<8x128xf32>
    %c0_18 = arith.constant 0 : index
    %c0_19 = arith.constant 0 : index
    %63 = vector.load %arg6[%c0_18, %c0_19] : memref<8x128xf32, #tpu.memory_space<vmem>>, vector<8x128xf32>
    tpu.vector_store %arg6[%c0_18, %c0_19], %62 {strides = array<i32>} : memref<8x128xf32, #tpu.memory_space<vmem>>, vector<8x128xf32>,
    return
  }
  func.func @transform_0(%arg0: i32) -> (i32, i32) {
    %c0_i32 = arith.constant 0 : i32
    %c0_i32_0 = arith.constant 0 : i32
    %c0_i32_1 = arith.constant 0 : i32
    return %c0_i32, %c0_i32_0 : i32, i32
  }
  func.func @transform_1(%arg0: i32) -> (i32, i32) {
    %c0_i32 = arith.constant 0 : i32
    %c0_i32_0 = arith.constant 0 : i32
    %c0_i32_1 = arith.constant 0 : i32
    return %c0_i32, %c0_i32_0 : i32, i32
  }
  func.func @transform_2(%arg0: i32) -> (i32, i32) {
    %c0_i32 = arith.constant 0 : i32
    %c0_i32_0 = arith.constant 0 : i32
    return %c0_i32, %arg0 : i32, i32
  }
  func.func @transform_3(%arg0: i32) -> (i32, i32) {
    %c0_i32 = arith.constant 0 : i32
    %c0_i32_0 = arith.constant 0 : i32
    return %c0_i32, %arg0 : i32, i32
  }
  func.func @transform_4(%arg0: i32) -> (i32, i32) {
    %c0_i32 = arith.constant 0 : i32
    %c0_i32_0 = arith.constant 0 : i32
    return %arg0, %c0_i32 : i32, i32
  }
  func.func @transform_5(%arg0: i32) -> (i32, i32) {
    %c0_i32 = arith.constant 0 : i32
    %c0_i32_0 = arith.constant 0 : i32
    return %arg0, %c0_i32 : i32, i32
  }
}

module attributes {stable_mosaic.version = 11 : i64} {
  func.func @kernel(%arg0: i32, %arg1: memref<40x40xf32, #tpu.memory_space<vmem>>, %arg2: memref<48x48xf32, #tpu.memory_space<vmem>>, %arg3: memref<8x48xf32, #tpu.memory_space<vmem>>, %arg4: memref<8x48xf32, #tpu.memory_space<vmem>>, %arg5: memref<8x128xf32, #tpu.memory_space<vmem>>, %arg6: memref<8x128xf32, #tpu.memory_space<vmem>>) attributes {dimension_semantics = [#tpu.dimension_semantics<parallel>], iteration_bounds = array<i64: 1>, scalar_prefetch = 0 : i64, scratch_operands = 0 : i64, tpu.core_type = #tpu.core_type<tc>, window_params = [{pipeline_mode = #tpu.pipeline_mode<synchronous>, transform_indices = @transform_0, window_bounds = array<i64: 40, 40>}, {pipeline_mode = #tpu.pipeline_mode<synchronous>, transform_indices = @transform_1, window_bounds = array<i64: 48, 48>}, {transform_indices = @transform_2, window_bounds = array<i64: 8, 48>}, {transform_indices = @transform_3, window_bounds = array<i64: 8, 48>}, {transform_indices = @transform_4, window_bounds = array<i64: 8, 128>}, {transform_indices = @transform_5, window_bounds = array<i64: 8, 128>}]} {
    %c0 = arith.constant 0 : index
    %c0_0 = arith.constant 0 : index
    %0 = vector.load %arg3[%c0, %c0_0] : memref<8x48xf32, #tpu.memory_space<vmem>>, vector<8x48xf32>
    %c0_1 = arith.constant 0 : index
    %c0_2 = arith.constant 0 : index
    %1 = vector.load %arg4[%c0_1, %c0_2] : memref<8x48xf32, #tpu.memory_space<vmem>>, vector<8x48xf32>
    %2 = arith.mulf %0, %0 : vector<8x48xf32>
    %3 = arith.mulf %1, %1 : vector<8x48xf32>
    %4 = arith.mulf %0, %1 : vector<8x48xf32>
    %5 = tpu.concatenate %0, %1, %2, %3, %4 in 0 : vector<8x48xf32>, vector<8x48xf32>, vector<8x48xf32>, vector<8x48xf32>, vector<8x48xf32> -> vector<40x48xf32>
    %c0_3 = arith.constant 0 : index
    %c0_4 = arith.constant 0 : index
    %6 = vector.load %arg1[%c0_3, %c0_4] : memref<40x40xf32, #tpu.memory_space<vmem>>, vector<40x40xf32>
    %cst = arith.constant dense<0.000000e+00> : vector<40x48xf32>
    %7 = tpu.matmul %6, %5, %cst {dimension_numbers = #tpu.dot_dimension_numbers<[1], [0], [0], [1], [0, 0, 1, 1], [], []>} : vector<40x40xf32>, vector<40x48xf32>, vector<40x48xf32> -> vector<40x48xf32>
    %c0_5 = arith.constant 0 : index
    %c0_6 = arith.constant 0 : index
    %8 = vector.load %arg2[%c0_5, %c0_6] : memref<48x48xf32, #tpu.memory_space<vmem>>, vector<48x48xf32>
    %cst_7 = arith.constant dense<0.000000e+00> : vector<40x48xf32>
    %9 = tpu.matmul %7, %8, %cst_7 {dimension_numbers = #tpu.dot_dimension_numbers<[1], [0], [0], [1], [0, 0, 1, 1], [], []>} : vector<40x48xf32>, vector<48x48xf32>, vector<40x48xf32> -> vector<40x48xf32>
    %10 = vector.extract_strided_slice %9 {offsets = [0, 0], sizes = [8, 48], strides = [1, 1]} : vector<40x48xf32> to vector<8x48xf32>
    %11 = vector.extract_strided_slice %9 {offsets = [8, 0], sizes = [8, 48], strides = [1, 1]} : vector<40x48xf32> to vector<8x48xf32>
    %12 = vector.extract_strided_slice %9 {offsets = [16, 0], sizes = [8, 48], strides = [1, 1]} : vector<40x48xf32> to vector<8x48xf32>
    %13 = vector.extract_strided_slice %9 {offsets = [24, 0], sizes = [8, 48], strides = [1, 1]} : vector<40x48xf32> to vector<8x48xf32>
    %14 = vector.extract_strided_slice %9 {offsets = [32, 0], sizes = [8, 48], strides = [1, 1]} : vector<40x48xf32> to vector<8x48xf32>
    %15 = arith.mulf %10, %10 : vector<8x48xf32>
    %16 = arith.subf %12, %15 : vector<8x48xf32>
    %17 = arith.mulf %11, %11 : vector<8x48xf32>
    %18 = arith.subf %13, %17 : vector<8x48xf32>
    %19 = arith.mulf %10, %11 : vector<8x48xf32>
    %20 = arith.subf %14, %19 : vector<8x48xf32>
    %cst_8 = arith.constant 2.000000e+00 : f32
    %21 = vector.broadcast %cst_8 : f32 to vector<8x48xf32>
    %22 = arith.mulf %21, %10 : vector<8x48xf32>
    %23 = arith.mulf %22, %11 : vector<8x48xf32>
    %cst_9 = arith.constant 9.99999974E-5 : f32
    %24 = vector.broadcast %cst_9 : f32 to vector<8x48xf32>
    %25 = arith.addf %23, %24 : vector<8x48xf32>
    %cst_10 = arith.constant 2.000000e+00 : f32
    %26 = vector.broadcast %cst_10 : f32 to vector<8x48xf32>
    %27 = arith.mulf %26, %20 : vector<8x48xf32>
    %cst_11 = arith.constant 8.99999984E-4 : f32
    %28 = vector.broadcast %cst_11 : f32 to vector<8x48xf32>
    %29 = arith.addf %27, %28 : vector<8x48xf32>
    %30 = arith.mulf %10, %10 : vector<8x48xf32>
    %31 = arith.mulf %11, %11 : vector<8x48xf32>
    %32 = arith.addf %30, %31 : vector<8x48xf32>
    %cst_12 = arith.constant 9.99999974E-5 : f32
    %33 = vector.broadcast %cst_12 : f32 to vector<8x48xf32>
    %34 = arith.addf %32, %33 : vector<8x48xf32>
    %35 = arith.addf %16, %18 : vector<8x48xf32>
    %cst_13 = arith.constant 8.99999984E-4 : f32
    %36 = vector.broadcast %cst_13 : f32 to vector<8x48xf32>
    %37 = arith.addf %35, %36 : vector<8x48xf32>
    %38 = arith.divf %25, %34 : vector<8x48xf32>
    %39 = arith.divf %29, %37 : vector<8x48xf32>
    %40 = arith.mulf %38, %39 : vector<8x48xf32>
    %41 = vector.shape_cast %40 : vector<8x48xf32> to vector<1x8x48xf32>
    %cst_14 = arith.constant dense<0.000000e+00> : vector<1xf32>
    %42 = vector.multi_reduction <add>, %41, %cst_14 [1, 2] : vector<1x8x48xf32> to vector<1xf32>
    %43 = vector.shape_cast %42 : vector<1xf32> to vector<1x1x1xf32>
    %44 = vector.extract %43[0, 0, 0] : f32 from vector<1x1x1xf32>
    %45 = vector.broadcast %44 : f32 to vector<1x1xf32>
    %46 = vector.shape_cast %45 : vector<1x1xf32> to vector<1x1xf32>
    %47 = vector.broadcast %46 : vector<1x1xf32> to vector<8x128xf32>
    %c0_15 = arith.constant 0 : index
    %c0_16 = arith.constant 0 : index
    %48 = vector.load %arg5[%c0_15, %c0_16] : memref<8x128xf32, #tpu.memory_space<vmem>>, vector<8x128xf32>
    tpu.vector_store %arg5[%c0_15, %c0_16], %47 {strides = array<i32>} : memref<8x128xf32, #tpu.memory_space<vmem>>, vector<8x128xf32>,
    %49 = vector.shape_cast %39 : vector<8x48xf32> to vector<1x8x48xf32>
    %cst_17 = arith.constant dense<0.000000e+00> : vector<1xf32>
    %50 = vector.multi_reduction <add>, %49, %cst_17 [1, 2] : vector<1x8x48xf32> to vector<1xf32>
    %51 = vector.shape_cast %50 : vector<1xf32> to vector<1x1x1xf32>
    %52 = vector.extract %51[0, 0, 0] : f32 from vector<1x1x1xf32>
    %53 = vector.broadcast %52 : f32 to vector<1x1xf32>
    %54 = vector.shape_cast %53 : vector<1x1xf32> to vector<1x1xf32>
    %55 = vector.broadcast %54 : vector<1x1xf32> to vector<8x128xf32>
    %c0_18 = arith.constant 0 : index
    %c0_19 = arith.constant 0 : index
    %56 = vector.load %arg6[%c0_18, %c0_19] : memref<8x128xf32, #tpu.memory_space<vmem>>, vector<8x128xf32>
    tpu.vector_store %arg6[%c0_18, %c0_19], %55 {strides = array<i32>} : memref<8x128xf32, #tpu.memory_space<vmem>>, vector<8x128xf32>,
    return
  }
  func.func @transform_0(%arg0: i32) -> (i32, i32) {
    %c0_i32 = arith.constant 0 : i32
    %c0_i32_0 = arith.constant 0 : i32
    %c0_i32_1 = arith.constant 0 : i32
    return %c0_i32, %c0_i32_0 : i32, i32
  }
  func.func @transform_1(%arg0: i32) -> (i32, i32) {
    %c0_i32 = arith.constant 0 : i32
    %c0_i32_0 = arith.constant 0 : i32
    %c0_i32_1 = arith.constant 0 : i32
    return %c0_i32, %c0_i32_0 : i32, i32
  }
  func.func @transform_2(%arg0: i32) -> (i32, i32) {
    %c0_i32 = arith.constant 0 : i32
    %c0_i32_0 = arith.constant 0 : i32
    return %c0_i32, %arg0 : i32, i32
  }
  func.func @transform_3(%arg0: i32) -> (i32, i32) {
    %c0_i32 = arith.constant 0 : i32
    %c0_i32_0 = arith.constant 0 : i32
    return %c0_i32, %arg0 : i32, i32
  }
  func.func @transform_4(%arg0: i32) -> (i32, i32) {
    %c0_i32 = arith.constant 0 : i32
    %c0_i32_0 = arith.constant 0 : i32
    return %arg0, %c0_i32 : i32, i32
  }
  func.func @transform_5(%arg0: i32) -> (i32, i32) {
    %c0_i32 = arith.constant 0 : i32
    %c0_i32_0 = arith.constant 0 : i32
    return %arg0, %c0_i32 : i32, i32
  }
}

module attributes {stable_mosaic.version = 11 : i64} {
  func.func @kernel(%arg0: i32, %arg1: memref<40x40xf32, #tpu.memory_space<vmem>>, %arg2: memref<24x24xf32, #tpu.memory_space<vmem>>, %arg3: memref<8x24xf32, #tpu.memory_space<vmem>>, %arg4: memref<8x24xf32, #tpu.memory_space<vmem>>, %arg5: memref<8x128xf32, #tpu.memory_space<vmem>>, %arg6: memref<8x128xf32, #tpu.memory_space<vmem>>) attributes {dimension_semantics = [#tpu.dimension_semantics<parallel>], iteration_bounds = array<i64: 1>, scalar_prefetch = 0 : i64, scratch_operands = 0 : i64, tpu.core_type = #tpu.core_type<tc>, window_params = [{pipeline_mode = #tpu.pipeline_mode<synchronous>, transform_indices = @transform_0, window_bounds = array<i64: 40, 40>}, {pipeline_mode = #tpu.pipeline_mode<synchronous>, transform_indices = @transform_1, window_bounds = array<i64: 24, 24>}, {transform_indices = @transform_2, window_bounds = array<i64: 8, 24>}, {transform_indices = @transform_3, window_bounds = array<i64: 8, 24>}, {transform_indices = @transform_4, window_bounds = array<i64: 8, 128>}, {transform_indices = @transform_5, window_bounds = array<i64: 8, 128>}]} {
    %c0 = arith.constant 0 : index
    %c0_0 = arith.constant 0 : index
    %0 = vector.load %arg3[%c0, %c0_0] : memref<8x24xf32, #tpu.memory_space<vmem>>, vector<8x24xf32>
    %c0_1 = arith.constant 0 : index
    %c0_2 = arith.constant 0 : index
    %1 = vector.load %arg4[%c0_1, %c0_2] : memref<8x24xf32, #tpu.memory_space<vmem>>, vector<8x24xf32>
    %2 = arith.mulf %0, %0 : vector<8x24xf32>
    %3 = arith.mulf %1, %1 : vector<8x24xf32>
    %4 = arith.mulf %0, %1 : vector<8x24xf32>
    %5 = tpu.concatenate %0, %1, %2, %3, %4 in 0 : vector<8x24xf32>, vector<8x24xf32>, vector<8x24xf32>, vector<8x24xf32>, vector<8x24xf32> -> vector<40x24xf32>
    %c0_3 = arith.constant 0 : index
    %c0_4 = arith.constant 0 : index
    %6 = vector.load %arg1[%c0_3, %c0_4] : memref<40x40xf32, #tpu.memory_space<vmem>>, vector<40x40xf32>
    %cst = arith.constant dense<0.000000e+00> : vector<40x24xf32>
    %7 = tpu.matmul %6, %5, %cst {dimension_numbers = #tpu.dot_dimension_numbers<[1], [0], [0], [1], [0, 0, 1, 1], [], []>} : vector<40x40xf32>, vector<40x24xf32>, vector<40x24xf32> -> vector<40x24xf32>
    %c0_5 = arith.constant 0 : index
    %c0_6 = arith.constant 0 : index
    %8 = vector.load %arg2[%c0_5, %c0_6] : memref<24x24xf32, #tpu.memory_space<vmem>>, vector<24x24xf32>
    %cst_7 = arith.constant dense<0.000000e+00> : vector<40x24xf32>
    %9 = tpu.matmul %7, %8, %cst_7 {dimension_numbers = #tpu.dot_dimension_numbers<[1], [0], [0], [1], [0, 0, 1, 1], [], []>} : vector<40x24xf32>, vector<24x24xf32>, vector<40x24xf32> -> vector<40x24xf32>
    %10 = vector.extract_strided_slice %9 {offsets = [0, 0], sizes = [8, 24], strides = [1, 1]} : vector<40x24xf32> to vector<8x24xf32>
    %11 = vector.extract_strided_slice %9 {offsets = [8, 0], sizes = [8, 24], strides = [1, 1]} : vector<40x24xf32> to vector<8x24xf32>
    %12 = vector.extract_strided_slice %9 {offsets = [16, 0], sizes = [8, 24], strides = [1, 1]} : vector<40x24xf32> to vector<8x24xf32>
    %13 = vector.extract_strided_slice %9 {offsets = [24, 0], sizes = [8, 24], strides = [1, 1]} : vector<40x24xf32> to vector<8x24xf32>
    %14 = vector.extract_strided_slice %9 {offsets = [32, 0], sizes = [8, 24], strides = [1, 1]} : vector<40x24xf32> to vector<8x24xf32>
    %15 = arith.mulf %10, %10 : vector<8x24xf32>
    %16 = arith.subf %12, %15 : vector<8x24xf32>
    %17 = arith.mulf %11, %11 : vector<8x24xf32>
    %18 = arith.subf %13, %17 : vector<8x24xf32>
    %19 = arith.mulf %10, %11 : vector<8x24xf32>
    %20 = arith.subf %14, %19 : vector<8x24xf32>
    %cst_8 = arith.constant 2.000000e+00 : f32
    %21 = vector.broadcast %cst_8 : f32 to vector<8x24xf32>
    %22 = arith.mulf %21, %10 : vector<8x24xf32>
    %23 = arith.mulf %22, %11 : vector<8x24xf32>
    %cst_9 = arith.constant 9.99999974E-5 : f32
    %24 = vector.broadcast %cst_9 : f32 to vector<8x24xf32>
    %25 = arith.addf %23, %24 : vector<8x24xf32>
    %cst_10 = arith.constant 2.000000e+00 : f32
    %26 = vector.broadcast %cst_10 : f32 to vector<8x24xf32>
    %27 = arith.mulf %26, %20 : vector<8x24xf32>
    %cst_11 = arith.constant 8.99999984E-4 : f32
    %28 = vector.broadcast %cst_11 : f32 to vector<8x24xf32>
    %29 = arith.addf %27, %28 : vector<8x24xf32>
    %30 = arith.mulf %10, %10 : vector<8x24xf32>
    %31 = arith.mulf %11, %11 : vector<8x24xf32>
    %32 = arith.addf %30, %31 : vector<8x24xf32>
    %cst_12 = arith.constant 9.99999974E-5 : f32
    %33 = vector.broadcast %cst_12 : f32 to vector<8x24xf32>
    %34 = arith.addf %32, %33 : vector<8x24xf32>
    %35 = arith.addf %16, %18 : vector<8x24xf32>
    %cst_13 = arith.constant 8.99999984E-4 : f32
    %36 = vector.broadcast %cst_13 : f32 to vector<8x24xf32>
    %37 = arith.addf %35, %36 : vector<8x24xf32>
    %38 = arith.divf %25, %34 : vector<8x24xf32>
    %39 = arith.divf %29, %37 : vector<8x24xf32>
    %40 = arith.mulf %38, %39 : vector<8x24xf32>
    %41 = tpu.iota {dimensions = array<i32: 0>} : vector<8x24xi32>
    %c4_i32 = arith.constant 4 : i32
    %42 = vector.broadcast %c4_i32 : i32 to vector<8x24xi32>
    %43 = arith.cmpi slt, %41, %42 : vector<8x24xi32>
    %44 = arith.extui %43 : vector<8x24xi1> to vector<8x24xi32>
    %45 = arith.sitofp %44 : vector<8x24xi32> to vector<8x24xf32>
    %46 = arith.mulf %40, %45 : vector<8x24xf32>
    %47 = arith.mulf %39, %45 : vector<8x24xf32>
    %48 = vector.shape_cast %46 : vector<8x24xf32> to vector<1x8x24xf32>
    %cst_14 = arith.constant dense<0.000000e+00> : vector<1xf32>
    %49 = vector.multi_reduction <add>, %48, %cst_14 [1, 2] : vector<1x8x24xf32> to vector<1xf32>
    %50 = vector.shape_cast %49 : vector<1xf32> to vector<1x1x1xf32>
    %51 = vector.extract %50[0, 0, 0] : f32 from vector<1x1x1xf32>
    %52 = vector.broadcast %51 : f32 to vector<1x1xf32>
    %53 = vector.shape_cast %52 : vector<1x1xf32> to vector<1x1xf32>
    %54 = vector.broadcast %53 : vector<1x1xf32> to vector<8x128xf32>
    %c0_15 = arith.constant 0 : index
    %c0_16 = arith.constant 0 : index
    %55 = vector.load %arg5[%c0_15, %c0_16] : memref<8x128xf32, #tpu.memory_space<vmem>>, vector<8x128xf32>
    tpu.vector_store %arg5[%c0_15, %c0_16], %54 {strides = array<i32>} : memref<8x128xf32, #tpu.memory_space<vmem>>, vector<8x128xf32>,
    %56 = vector.shape_cast %47 : vector<8x24xf32> to vector<1x8x24xf32>
    %cst_17 = arith.constant dense<0.000000e+00> : vector<1xf32>
    %57 = vector.multi_reduction <add>, %56, %cst_17 [1, 2] : vector<1x8x24xf32> to vector<1xf32>
    %58 = vector.shape_cast %57 : vector<1xf32> to vector<1x1x1xf32>
    %59 = vector.extract %58[0, 0, 0] : f32 from vector<1x1x1xf32>
    %60 = vector.broadcast %59 : f32 to vector<1x1xf32>
    %61 = vector.shape_cast %60 : vector<1x1xf32> to vector<1x1xf32>
    %62 = vector.broadcast %61 : vector<1x1xf32> to vector<8x128xf32>
    %c0_18 = arith.constant 0 : index
    %c0_19 = arith.constant 0 : index
    %63 = vector.load %arg6[%c0_18, %c0_19] : memref<8x128xf32, #tpu.memory_space<vmem>>, vector<8x128xf32>
    tpu.vector_store %arg6[%c0_18, %c0_19], %62 {strides = array<i32>} : memref<8x128xf32, #tpu.memory_space<vmem>>, vector<8x128xf32>,
    return
  }
  func.func @transform_0(%arg0: i32) -> (i32, i32) {
    %c0_i32 = arith.constant 0 : i32
    %c0_i32_0 = arith.constant 0 : i32
    %c0_i32_1 = arith.constant 0 : i32
    return %c0_i32, %c0_i32_0 : i32, i32
  }
  func.func @transform_1(%arg0: i32) -> (i32, i32) {
    %c0_i32 = arith.constant 0 : i32
    %c0_i32_0 = arith.constant 0 : i32
    %c0_i32_1 = arith.constant 0 : i32
    return %c0_i32, %c0_i32_0 : i32, i32
  }
  func.func @transform_2(%arg0: i32) -> (i32, i32) {
    %c0_i32 = arith.constant 0 : i32
    %c0_i32_0 = arith.constant 0 : i32
    return %c0_i32, %arg0 : i32, i32
  }
  func.func @transform_3(%arg0: i32) -> (i32, i32) {
    %c0_i32 = arith.constant 0 : i32
    %c0_i32_0 = arith.constant 0 : i32
    return %c0_i32, %arg0 : i32, i32
  }
  func.func @transform_4(%arg0: i32) -> (i32, i32) {
    %c0_i32 = arith.constant 0 : i32
    %c0_i32_0 = arith.constant 0 : i32
    return %arg0, %c0_i32 : i32, i32
  }
  func.func @transform_5(%arg0: i32) -> (i32, i32) {
    %c0_i32 = arith.constant 0 : i32
    %c0_i32_0 = arith.constant 0 : i32
    return %arg0, %c0_i32 : i32, i32
  }
}

</mosaic_0001>

<bundles_post_ra>
// kernel: _lambda_.5
= control target key start
LH: loop header
LB: loop body
LE: loop exit
PB: predicated region body
PF: predicated region fallthrough
CT: control target
= control target key end

     0   :  { %vm40_vm0 = vcmask 654336   ;;  %s740_s0 = inlined_call_operand.vmem [shape: f32[80,80], index: 0, kind: input, shape index: {}]   ;;  %s741_s1 = inlined_call_operand.vmem [shape: f32[96,96], index: 1, kind: input, shape index: {}]   ;;  %s742_s2 = inlined_call_operand.vmem [shape: f32[16,96], index: 2, kind: input, shape index: {}]   ;;  %s743_s3 = inlined_call_operand.vmem [shape: f32[16,96], index: 3, kind: input, shape index: {}]   ;;  %s744_s4 = inlined_call_operand.hbm [shape: f32[8,128], index: 4, kind: output, shape index: {0}]   ;;  %s745_s5 = inlined_call_operand.vmem [shape: f32[8,128], index: 5, kind: output, shape index: {1}]  }
   0x1   :  { %v21_v0 = vld [vmem:[%s742_s2 + $0x8] sm:$0xff]  ;;  %v20_v2 = vld [vmem:[%s742_s2] sm:$0xff]  ;;  %v197_v8 = vld [vmem:[%s741_s1 + $0x58] sm:$0xff] }
   0x2   :  { %v23_v1 = vld [vmem:[%s743_s3 + $0x8] sm:$0xff]  ;;  %v22_v4 = vld [vmem:[%s743_s3] sm:$0xff]  ;;  %527 = vmatprep.subr.mxu1 %v197_v8  ;;  %v196_v10 = vld [vmem:[%s741_s1 + $0x50] sm:$0xff]  ;;  %v25_v12 = vmul.f32 %v21_v0, %v21_v0 }
   0x3   :  { %v29_v3 = vmul.f32 %v23_v1, %v21_v0  ;;  %v30_v5 = vld [vmem:[%s740_s0] sm:$0xff]  ;;  %v28_v6 = vmul.f32 %v22_v4, %v20_v2  ;;  %v27_v7 = vmul.f32 %v23_v1, %v23_v1  ;;  %v26_v9 = vmul.f32 %v22_v4, %v22_v4  ;;  %528 = vmatpush3.msra.mxu1 %v197_v8  ;;  %v195_v11 = vld [vmem:[%s741_s1 + $0x48] sm:$0xff] }
   0x4   :  { %512 = vmatprep.mubr.msk.f32.mxu0 %vm40_vm0, %v30_v5  ;;  %529 = vmatprep.subr.mxu1 %v196_v10  ;;  %v194_v13 = vld [vmem:[%s741_s1 + $0x40] sm:$0xff] }
   0x5   :  { %492 = vmatprep.subr.mxu0 %v29_v3  ;;  %530 = vmatpush3.msra.mxu1 %v196_v10 }
   0x6   :  { %493 = vmatpush3.msra.mxu0 %v29_v3 }
   0x7   :  { %494 = vmatprep.subr.mxu0 %v28_v6 }
   0x8   :  { %495 = vmatpush3.msra.mxu0 %v28_v6 }
   0x9   :  { %496 = vmatprep.subr.mxu0 %v27_v7 }
   0xa   :  { %497 = vmatpush3.msra.mxu0 %v27_v7 }
   0xb   :  { %11 = vsyncpa [#allocation3], 0  ;;  %498 = vmatprep.subr.mxu0 %v26_v9  ;;  %v24_v14 = vmul.f32 %v20_v2, %v20_v2  ;;  %531 = vmatprep.subr.mxu1 %v195_v11  ;;  %v193_v15 = vld [vmem:[%s741_s1 + $0x38] sm:$0xff]  ;;  %v192_v16 = vld [vmem:[%s741_s1 + $0x30] sm:$0xff]  ;;  %vm198_vm1 = vcmask 785408  }
   0xc   :  { %499 = vmatpush3.msra.mxu0 %v26_v9  ;;  %532 = vmatpush3.msra.mxu1 %v195_v11  ;;  %v191_v17 = vld [vmem:[%s741_s1 + $0x28] sm:$0xff]  ;;  %v190_v18 = vld [vmem:[%s741_s1 + $0x20] sm:$0xff]  ;;  %v189_v19 = vld [vmem:[%s741_s1 + $0x18] sm:$0xff] }
   0xd   :  { %500 = vmatprep.subr.mxu0 %v25_v12  ;;  %533 = vmatprep.subr.mxu1 %v194_v13  ;;  %v31_v20 = vld [vmem:[%s740_s0 + $0x8] sm:$0xff]  ;;  %v188_v21 = vld [vmem:[%s741_s1 + $0x10] sm:$0xff]  ;;  %v33_v23 = vld [vmem:[%s740_s0 + $0x18] sm:$0xff] }
   0xe   :  { %501 = vmatpush3.msra.mxu0 %v25_v12  ;;  %534 = vmatpush3.msra.mxu1 %v194_v13  ;;  %v32_v22 = vld [vmem:[%s740_s0 + $0x10] sm:$0xff]  ;;  %v34_v24 = vld [vmem:[%s740_s0 + $0x20] sm:$0xff]  ;;  %v35_v25 = vld [vmem:[%s740_s0 + $0x28] sm:$0xff] }
   0xf   :  { %502 = vmatprep.subr.mxu0 %v24_v14  ;;  %535 = vmatprep.subr.mxu1 %v193_v15  ;;  %v36_v26 = vld [vmem:[%s740_s0 + $0x30] sm:$0xff]  ;;  %v37_v27 = vld [vmem:[%s740_s0 + $0x38] sm:$0xff]  ;;  %v38_v28 = vld [vmem:[%s740_s0 + $0x40] sm:$0xff] }
  0x10   :  { %503 = vmatpush3.msra.mxu0 %v24_v14  ;;  %536 = vmatpush3.msra.mxu1 %v193_v15  ;;  %v39_v29 = vld [vmem:[%s740_s0 + $0x48] sm:$0xff]  ;;  %v186_v31 = vld [vmem:[%s741_s1] sm:$0xff]  ;;  %s601_s0 = smov [#allocation2]  }
  0x11   :  { %504 = vmatprep.subr.mxu0 %v23_v1  ;;  %537 = vmatprep.subr.mxu1 %v192_v16  ;;  %v187_v30 = vld [vmem:[%s741_s1 + $0x8] sm:$0xff]  ;;  %s418_s1 = sshll.u32 %s601_s0, 4  ;;  %s419_s1 = int_to_ptr.vmem [resolvable:$true] %s418_s1 }
  0x12   :  { %505 = vmatpush3.msra.mxu0 %v23_v1  ;;  %538 = vmatpush3.msra.mxu1 %v192_v16  ;;  %s579_s17 = scalar_lea.vmem %s419_s1, 128  ;;  %p584_p1 = scmp.lt.s32.totalorder %s419_s1, %s419_s1 }
  0x13   :  { %506 = vmatprep.subr.mxu0 %v22_v4  ;;  %539 = vmatprep.subr.mxu1 %v191_v17  ;;  %p580_p0 = scmp.ne.s32.totalorder %s419_s1, %s579_s17  ;;  %p585_p2 = scmp.lt.s32.totalorder %s579_s17, %s579_s17 }
  0x14   :  { %507 = vmatpush3.msra.mxu0 %v22_v4  ;;  %540 = vmatpush3.msra.mxu1 %v191_v17 }
  0x15   :  { %508 = vmatprep.subr.mxu0 %v21_v0  ;;  %541 = vmatprep.subr.mxu1 %v190_v18  ;;  %p586_p3 = por %p585_p2, %p584_p1 }
  0x16   :  { %509 = vmatpush3.msra.mxu0 %v21_v0  ;;  %542 = vmatpush3.msra.mxu1 %v190_v18 }
  0x17   :  { %510 = vmatprep.subr.mxu0 %v20_v2  ;;  %543 = vmatprep.subr.mxu1 %v189_v19  ;;  %p587_p4 = pnand %p586_p3, %p580_p0 }
  0x18   :  { %511 = vmatpush3.msra.mxu0 %v20_v2  ;;  %544 = vmatpush3.msra.mxu1 %v189_v19 }
  0x19   :  { %513 = vmatmul.mubr.msk.f32.vlgmr.msra.gmra.mxu0 %vm40_vm0, %v31_v20  ;;  %545 = vmatprep.subr.mxu1 %v188_v21 }
  0x1a   :  { %515 = vmatprep.mubr.msk.f32.mxu0 %vm40_vm0, %v32_v22  ;;  %546 = vmatpush3.msra.mxu1 %v188_v21 }
  0x1b   :  { %547 = vmatprep.subr.mxu1 %v187_v30 }
  0x1c   :  { %548 = vmatpush3.msra.mxu1 %v187_v30 }
  0x1d   :  { %516 = vmatmul.mubr.msk.f32.gmra.mxu0 %vm40_vm0, %v33_v23  ;;  %549 = vmatprep.subr.mxu1 %v186_v31 }
  0x1e   :  { %518 = vmatprep.mubr.msk.f32.mxu0 %vm40_vm0, %v34_v24  ;;  %550 = vmatpush3.msra.mxu1 %v186_v31 }
  0x21   :  { %519 = vmatmul.mubr.msk.f32.gmra.mxu0 %vm40_vm0, %v35_v25 }
  0x22   :  { %521 = vmatprep.mubr.msk.f32.mxu0 %vm40_vm0, %v36_v26 }
  0x25   :  { %522 = vmatmul.mubr.msk.f32.gmra.mxu0 %vm40_vm0, %v37_v27 }
  0x26   :  { %524 = vmatprep.mubr.msk.f32.mxu0 %vm40_vm0, %v38_v28 }
  0x29   :  { %525 = vmatmul.mubr.msk.f32.gmra.mxu0 %vm40_vm0, %v39_v29 }
  0xd9   :  { %v514_v32 = vpop.f32.mrf.mxu0 }
  0xdb   :  { %v137_v33 = vpop.f32.mrf.mxu0 }
  0xdc   :  { %551 = vmatprep.mubr.msk.f32.mxu1 %vm198_vm1, %v137_v33 }
  0xdd   :  { %v517_v34 = vpop.f32.mrf.mxu0  ;;  %552 = vmatmul.mubr.msk.f32.vlgmr.msra.gmra.mxu1 %vm198_vm1, %v514_v32 }
  0xdf   :  { %v147_v35 = vpop.f32.mrf.mxu0 }
  0xe0   :  { %554 = vmatprep.mubr.msk.f32.mxu1 %vm198_vm1, %v147_v35 }
  0xe1   :  { %v520_v36 = vpop.f32.mrf.mxu0  ;;  %555 = vmatmul.mubr.msk.f32.gmra.mxu1 %vm198_vm1, %v517_v34 }
  0xe3   :  { %v157_v37 = vpop.f32.mrf.mxu0 }
  0xe4   :  { %557 = vmatprep.mubr.msk.f32.mxu1 %vm198_vm1, %v157_v37 }
  0xe5   :  { %v523_v38 = vpop.f32.mrf.mxu0  ;;  %558 = vmatmul.mubr.msk.f32.gmra.mxu1 %vm198_vm1, %v520_v36 }
  0xe7   :  { %v167_v39 = vpop.f32.mrf.mxu0 }
  0xe8   :  { %560 = vmatprep.mubr.msk.f32.mxu1 %vm198_vm1, %v167_v39 }
  0xe9   :  { %v526_v40 = vpop.f32.mrf.mxu0  ;;  %561 = vmatmul.mubr.msk.f32.gmra.mxu1 %vm198_vm1, %v523_v38 }
  0xeb   :  { %v177_v41 = vpop.f32.mrf.mxu0 }
  0xec   :  { %563 = vmatprep.mubr.msk.f32.mxu1 %vm198_vm1, %v177_v41 }
  0xed   :  { %564 = vmatmul.mubr.msk.f32.gmra.mxu1 %vm198_vm1, %v526_v40 }
 0x19d   :  { %v553_v42 = vpop.f32.mrf.mxu1 }
 0x19e   :  { %v345_v47 = vmul.f32 %v553_v42, %v553_v42  ;;  %v357_v7 = vmul.f32 2.0, %v553_v42 }
 0x19f   :  { %v295_v43 = vpop.f32.mrf.mxu1 }
 0x1a0   :  { %v344_v50 = vmul.f32 %v295_v43, %v295_v43  ;;  %v356_v9 = vmul.f32 2.0, %v295_v43 }
 0x1a1   :  { %v556_v44 = vpop.f32.mrf.mxu1 }
 0x1a2   :  { %v349_v45 = vmul.f32 %v556_v44, %v556_v44  ;;  %v353_v3 = vmul.f32 %v556_v44, %v553_v42  ;;  %v359_v10 = vmul.f32 %v556_v44, %v357_v7 }
 0x1a3   :  { %v305_v46 = vpop.f32.mrf.mxu1 }
 0x1a4   :  { %v348_v48 = vmul.f32 %v305_v46, %v305_v46  ;;  %v367_v51 = vadd.f32 %v349_v45, %v345_v47  ;;  %v352_v6 = vmul.f32 %v305_v46, %v295_v43  ;;  %v358_v12 = vmul.f32 %v356_v9, %v305_v46 }
 0x1a5   :  { %v559_v49 = vpop.f32.mrf.mxu1  ;;  %v361_v16 = vadd.f32 0.0001, %v359_v10 }
 0x1a6   :  { %v366_v53 = vadd.f32 %v348_v48, %v344_v50  ;;  %v347_v55 = vsub.f32 %v559_v49, %v345_v47  ;;  %v369_v57 = vadd.f32 0.0001, %v367_v51  ;;  %v360_v19 = vadd.f32 0.0001, %v358_v12 }
 0x1a7   :  { %v315_v52 = vpop.f32.mrf.mxu1 }
 0x1a8   :  { %v368_v59 = vadd.f32 0.0001, %v366_v53  ;;  %v346_v60 = vsub.f32 %v315_v52, %v344_v50  ;;  %571 = vrcp.f32 %v369_v57 }
 0x1a9   :  { %v562_v54 = vpop.f32.mrf.mxu1 }
 0x1aa   :  { %v351_v56 = vsub.f32 %v562_v54, %v349_v45  ;;  %573 = vrcp.f32 %v368_v59 }
 0x1ab   :  { %v325_v58 = vpop.f32.mrf.mxu1 }
 0x1ac   :  { %v371_v61 = vadd.f32 %v351_v56, %v347_v55  ;;  %v350_v62 = vsub.f32 %v325_v58, %v348_v48 }
 0x1ad   :  { %v565_v1 = vpop.f32.mrf.mxu1 }
 0x1ae   :  { %v373_v63 = vadd.f32 0.0009, %v371_v61  ;;  %v370_v0 = vadd.f32 %v350_v62, %v346_v60  ;;  %v355_v5 = vsub.f32 %v565_v1, %v353_v3 }
 0x1af   :  { %v335_v4 = vpop.f32.mrf.mxu1 }
 0x1b0   :  { %575 = vrcp.f32 %v373_v63  ;;  %v372_v2 = vadd.f32 0.0009, %v370_v0  ;;  %v354_v8 = vsub.f32 %v335_v4, %v352_v6  ;;  %v363_v11 = vmul.f32 2.0, %v355_v5 }
 0x1b2   :  { %577 = vrcp.f32 %v372_v2  ;;  %v362_v13 = vmul.f32 2.0, %v354_v8  ;;  %v365_v17 = vadd.f32 0.0009, %v363_v11 }
 0x1b4   :  { %v364_v21 = vadd.f32 0.0009, %v362_v13 }
 0x1b5   :  { %v572_v14 = vpop.eup %571 }
 0x1b6   :  { %v377_v22 = vmul.f32 %v572_v14, %v361_v16 }
 0x1b7   :  { %v574_v15 = vpop.eup %573 }
 0x1b8   :  { %v375_v25 = vmul.f32 %v574_v15, %v360_v19 }
 0x1bd   :  { %v576_v18 = vpop.eup %575 }
 0x1be   :  { %v381_v20 = vmul.f32 %v576_v18, %v365_v17 }
 0x1bf   :  { %v578_v23 = vpop.eup %577 }
 0x1c0   :  { %v379_v24 = vmul.f32 %v578_v23, %v364_v21  ;;  %v383_v26 = vmul.f32 %v381_v20, %v377_v22  ;;  %v399_v32 = vsel %vm198_vm1, %v381_v20, 0.0 }
 0x1c2   :  { %v382_v27 = vmul.f32 %v379_v24, %v375_v25  ;;  %v385_v29 = vsel %vm198_vm1, %v383_v26, 0.0  ;;  %v398_v31 = vsel %vm198_vm1, %v379_v24, 0.0 }
 0x1c3   :  { %v400_v33 = vadd.f32 %v399_v32, %v398_v31 }
 0x1c4   :  { %v384_v28 = vsel %vm198_vm1, %v382_v27, 0.0 }
 0x1c5   :  { %v386_v30 = vadd.f32 %v385_v29, %v384_v28 }
 0x1c7   :  { %387 = vadd.xlane.f32.xlu0 %v386_v30 }
 0x1cb   :  { %401 = vadd.xlane.f32.xlu0 %v400_v33 }
 0x250   :  { %v388_v34 = vpop.xlane.xlu0 %387 }
 0x251   :  { %v389_v35 = vrot.slane %v388_v34, 4 }
 0x253   :  { %v390_v36 = vadd.f32 %v389_v35, %v388_v34 }
 0x254   :  { %v402_v37 = vpop.xlane.xlu0 %401 }
 0x255   :  { %v391_v38 = vrot.slane %v390_v36, 2  ;;  %v403_v39 = vrot.slane %v402_v37, 4 }
 0x257   :  { %v404_v40 = vadd.f32 %v403_v39, %v402_v37  ;;  %v392_v41 = vadd.f32 %v391_v38, %v390_v36 }
 0x259   :  { %v405_v42 = vrot.slane %v404_v40, 2  ;;  %v393_v43 = vrot.slane %v392_v41, 1 }
 0x25b   :  { %v406_v44 = vadd.f32 %v405_v42, %v404_v40  ;;  %v394_v45 = vadd.f32 %v393_v43, %v392_v41 }
 0x25d   :  { %566 = vpush %v394_v45  ;;  %v407_v46 = vrot.slane %v406_v44, 1 }
 0x25f   :  { %v408_v47 = vadd.f32 %v407_v46, %v406_v44 }
 0x261   :  { %568 = vpush %v408_v47 }
 0x28e   :  { %s567_s16 = spop %566 }
 0x28f   :  { %v396_v48 = vstv %s567_s16 }
 0x290   :  { %397 = vst [vmem:[#allocation2] sm:$0xff] %v396_v48 }
 0x291   :  { %590 = shalt.err (!%p587_p4)
}
 0x292   :  { %421 = dma.vmem_to_hbm [thread:$0]  %s419_s1, 128, %s744_s4, [#allocation3]  }
 0x293   :  { %s569_s20 = spop %568 }
 0x294   :  { %v410_v49 = vstv %s569_s20 }
 0x295   :  { %411 = vst [vmem:[%s745_s5] sm:$0xff] %v410_v49 }
 0x296   :  { %599 = dma.done.wait [#allocation3], 128  }
 0x297   :  { %600 = vsyncadd [#allocation3], 4294967168 }
 0x298   :  { %429 = vsyncpa [#allocation3], 1 }

// kernel: _lambda_.9
= control target key start
LH: loop header
LB: loop body
LE: loop exit
PB: predicated region body
PF: predicated region fallthrough
CT: control target
= control target key end

     0   :  { %v419_v2 = vmov 0.0   ;;  %vm420_vm0 = vmmov 0   ;;  %s516_s0 = inlined_call_operand.vmem [shape: f32[40,40], index: 0, kind: input, shape index: {}]   ;;  %s517_s1 = inlined_call_operand.vmem [shape: f32[6,6], index: 1, kind: input, shape index: {}]   ;;  %s518_s2 = inlined_call_operand.vmem [shape: f32[8,6], index: 2, kind: input, shape index: {}]   ;;  %s519_s3 = inlined_call_operand.vmem [shape: f32[8,6], index: 3, kind: input, shape index: {}]   ;;  %s520_s4 = inlined_call_operand.vmem [shape: f32[8,128], index: 4, kind: output, shape index: {0}]   ;;  %s521_s5 = inlined_call_operand.hbm [shape: f32[8,128], index: 5, kind: output, shape index: {1}]  }
   0x1   :  { %v20_v0 = vld [vmem:[%s518_s2] sm:$0xff]  ;;  %344 = vmatprep.subr.mxu0 %v419_v2  ;;  %354 = vmatprep.mubr.msk.f32.mxu0 %vm420_vm0, %v419_v2 }
   0x2   :  { %v21_v1 = vld [vmem:[%s519_s3] sm:$0xff]  ;;  %369 = vmatprep.subr.mxu1 %v419_v2  ;;  %371 = vmatprep.mubr.msk.f32.mxu1 %vm420_vm0, %v419_v2 }
   0x3   :  { %v24_v3 = vmul.f32 %v21_v1, %v20_v0  ;;  %v23_v4 = vmul.f32 %v21_v1, %v21_v1 }
   0x4   :  { %11 = vsyncpa [#allocation3], 0  ;;  %v22_v5 = vmul.f32 %v20_v0, %v20_v0  ;;  %v25_v6 = vld [vmem:[%s516_s0] sm:$0xff]  ;;  %vm30_vm1 = vcmask 326656   ;;  %v26_v7 = vld [vmem:[%s516_s0 + $0x8] sm:$0xff]  ;;  %vm153_vm2 = vcmask 1045504   ;;  %v267_v43 = vlaneseq }
   0x5   :  { %345 = vmatpush3.msra.mxu0 %v24_v3  ;;  %v27_v8 = vld [vmem:[%s516_s0 + $0x10] sm:$0xff]  ;;  %v28_v9 = vld [vmem:[%s516_s0 + $0x18] sm:$0xff]  ;;  %v29_v10 = vld [vmem:[%s516_s0 + $0x20] sm:$0xff]  ;;  %vm137_vm3 = vcmask 48128  }
   0x6   :  { %346 = vmatprep.subr.mxu0 %v419_v2  ;;  %v136_v11 = vld [vmem:[%s517_s1] sm:$0x3f]  ;;  %v268_v46 = vshrl.u32 %v267_v43, 7  ;;  %s421_s1 = smov [#allocation2]  }
   0x7   :  { %347 = vmatpush3.msra.mxu0 %v23_v4  ;;  %370 = vmatpush3.msk.msra.mxu1 %vm153_vm2, %v136_v11  ;;  %s306_s7 = sshll.u32 %s421_s1, 4  ;;  %s307_s7 = int_to_ptr.vmem [resolvable:$true] %s306_s7 }
   0x8   :  { %348 = vmatprep.subr.mxu0 %v419_v2  ;;  %vm269_vm4 = vcmp.lt.s32.totalorder %v268_v46, 1  ;;  %s397_s11 = scalar_lea.vmem %s307_s7, 128  ;;  %p402_p1 = scmp.lt.s32.totalorder %s307_s7, %s307_s7 }
   0x9   :  { %349 = vmatpush3.msra.mxu0 %v22_v5  ;;  %v327_v54 = vsel %vm269_vm4, 1.0, %v419_v2  ;;  %p398_p0 = scmp.ne.s32.totalorder %s307_s7, %s397_s11  ;;  %p403_p2 = scmp.lt.s32.totalorder %s397_s11, %s397_s11 }
   0xa   :  { %350 = vmatprep.subr.mxu0 %v419_v2 }
   0xb   :  { %351 = vmatpush3.msra.mxu0 %v21_v1  ;;  %p404_p3 = por %p403_p2, %p402_p1 }
   0xc   :  { %352 = vmatprep.subr.mxu0 %v419_v2 }
   0xd   :  { %353 = vmatpush3.msra.mxu0 %v20_v0  ;;  %p405_p4 = pnand %p404_p3, %p398_p0 }
   0xe   :  { %355 = vmatmul.mubr.msk.f32.vlgmr.msra.gmra.mxu0 %vm30_vm1, %v25_v6 }
   0xf   :  { %357 = vmatprep.mubr.msk.f32.mxu0 %vm420_vm0, %v419_v2 }
  0x12   :  { %358 = vmatmul.mubr.msk.f32.gmra.mxu0 %vm30_vm1, %v26_v7 }
  0x13   :  { %360 = vmatprep.mubr.msk.f32.mxu0 %vm420_vm0, %v419_v2 }
  0x16   :  { %361 = vmatmul.mubr.msk.f32.gmra.mxu0 %vm30_vm1, %v27_v8 }
  0x17   :  { %363 = vmatprep.mubr.msk.f32.mxu0 %vm420_vm0, %v419_v2 }
  0x1a   :  { %364 = vmatmul.mubr.msk.f32.gmra.mxu0 %vm30_vm1, %v28_v9 }
  0x1b   :  { %366 = vmatprep.mubr.msk.f32.mxu0 %vm420_vm0, %v419_v2 }
  0x1e   :  { %367 = vmatmul.mubr.msk.f32.gmra.mxu0 %vm30_vm1, %v29_v10 }
  0xce   :  { %v112_v12 = vpop.f32.mrf.mxu0 }
  0xcf   :  { %372 = vmatmul.mubr.msk.f32.vlgmr.msra.gmra.mxu1 %vm137_vm3, %v112_v12 }
  0xd0   :  { %v356_v13 = vpop.f32.mrf.mxu0  ;;  %374 = vmatprep.mubr.msk.f32.mxu1 %vm420_vm0, %v419_v2 }
  0xd2   :  { %v117_v14 = vpop.f32.mrf.mxu0 }
  0xd3   :  { %375 = vmatmul.mubr.msk.f32.gmra.mxu1 %vm137_vm3, %v117_v14 }
  0xd4   :  { %v359_v15 = vpop.f32.mrf.mxu0  ;;  %377 = vmatprep.mubr.msk.f32.mxu1 %vm420_vm0, %v419_v2 }
  0xd6   :  { %v122_v16 = vpop.f32.mrf.mxu0 }
  0xd7   :  { %378 = vmatmul.mubr.msk.f32.gmra.mxu1 %vm137_vm3, %v122_v16 }
  0xd8   :  { %v362_v17 = vpop.f32.mrf.mxu0  ;;  %380 = vmatprep.mubr.msk.f32.mxu1 %vm420_vm0, %v419_v2 }
  0xda   :  { %v127_v18 = vpop.f32.mrf.mxu0 }
  0xdb   :  { %381 = vmatmul.mubr.msk.f32.gmra.mxu1 %vm137_vm3, %v127_v18 }
  0xdc   :  { %v365_v19 = vpop.f32.mrf.mxu0  ;;  %383 = vmatprep.mubr.msk.f32.mxu1 %vm420_vm0, %v419_v2 }
  0xde   :  { %v132_v20 = vpop.f32.mrf.mxu0 }
  0xdf   :  { %384 = vmatmul.mubr.msk.f32.gmra.mxu1 %vm137_vm3, %v132_v20 }
  0xe0   :  { %v368_v21 = vpop.f32.mrf.mxu0 }
 0x18f   :  { %v223_v22 = vpop.f32.mrf.mxu1 }
 0x190   :  { %v247_v27 = vmul.f32 %v223_v22, %v223_v22  ;;  %v253_v42 = vmul.f32 2.0, %v223_v22 }
 0x191   :  { %v373_v23 = vpop.f32.mrf.mxu1 }
 0x193   :  { %v228_v24 = vpop.f32.mrf.mxu1 }
 0x194   :  { %v249_v25 = vmul.f32 %v228_v24, %v228_v24  ;;  %v251_v40 = vmul.f32 %v228_v24, %v223_v22  ;;  %v254_v44 = vmul.f32 %v253_v42, %v228_v24 }
 0x195   :  { %v376_v26 = vpop.f32.mrf.mxu1 }
 0x196   :  { %v258_v29 = vadd.f32 %v249_v25, %v247_v27  ;;  %v255_v48 = vadd.f32 0.0001, %v254_v44 }
 0x197   :  { %v233_v28 = vpop.f32.mrf.mxu1 }
 0x198   :  { %v248_v32 = vsub.f32 %v233_v28, %v247_v27  ;;  %v259_v34 = vadd.f32 0.0001, %v258_v29 }
 0x199   :  { %v379_v30 = vpop.f32.mrf.mxu1 }
 0x19a   :  { %393 = vrcp.f32 %v259_v34 }
 0x19b   :  { %v238_v31 = vpop.f32.mrf.mxu1 }
 0x19c   :  { %v250_v33 = vsub.f32 %v238_v31, %v249_v25 }
 0x19d   :  { %v382_v35 = vpop.f32.mrf.mxu1 }
 0x19e   :  { %v260_v36 = vadd.f32 %v250_v33, %v248_v32 }
 0x19f   :  { %v243_v37 = vpop.f32.mrf.mxu1 }
 0x1a0   :  { %v261_v38 = vadd.f32 0.0009, %v260_v36  ;;  %v252_v41 = vsub.f32 %v243_v37, %v251_v40 }
 0x1a1   :  { %v385_v39 = vpop.f32.mrf.mxu1 }
 0x1a2   :  { %395 = vrcp.f32 %v261_v38  ;;  %v256_v45 = vmul.f32 2.0, %v252_v41 }
 0x1a4   :  { %v257_v49 = vadd.f32 0.0009, %v256_v45 }
 0x1a7   :  { %v394_v47 = vpop.eup %393 }
 0x1a8   :  { %v263_v52 = vmul.f32 %v394_v47, %v255_v48 }
 0x1af   :  { %v396_v50 = vpop.eup %395 }
 0x1b0   :  { %v265_v51 = vmul.f32 %v396_v50, %v257_v49 }
 0x1b2   :  { %v266_v53 = vmul.f32 %v265_v51, %v263_v52  ;;  %v273_v57 = vmul.f32 %v327_v54, %v265_v51 }
 0x1b4   :  { %v272_v55 = vmul.f32 %v327_v54, %v266_v53  ;;  %v286_v58 = vsel %vm137_vm3, %v273_v57, 0.0 }
 0x1b6   :  { %v274_v56 = vsel %vm137_vm3, %v272_v55, 0.0 }
 0x1b7   :  { %275 = vadd.xlane.f32.xlu0 %v274_v56 }
 0x1bb   :  { %287 = vadd.xlane.f32.xlu0 %v286_v58 }
 0x240   :  { %v276_v59 = vpop.xlane.xlu0 %275 }
 0x241   :  { %v277_v60 = vrot.slane %v276_v59, 4 }
 0x243   :  { %v278_v61 = vadd.f32 %v277_v60, %v276_v59 }
 0x244   :  { %v288_v62 = vpop.xlane.xlu0 %287 }
 0x245   :  { %v279_v63 = vrot.slane %v278_v61, 2  ;;  %v289_v0 = vrot.slane %v288_v62, 4 }
 0x247   :  { %v290_v1 = vadd.f32 %v289_v0, %v288_v62  ;;  %v280_v3 = vadd.f32 %v279_v63, %v278_v61 }
 0x249   :  { %v291_v4 = vrot.slane %v290_v1, 2  ;;  %v281_v5 = vrot.slane %v280_v3, 1 }
 0x24b   :  { %v292_v6 = vadd.f32 %v291_v4, %v290_v1  ;;  %v282_v2 = vadd.f32 %v281_v5, %v280_v3 }
 0x24d   :  { %386 = vpush %v282_v2  ;;  %v293_v7 = vrot.slane %v292_v6, 1 }
 0x24f   :  { %v294_v8 = vadd.f32 %v293_v7, %v292_v6 }
 0x251   :  { %388 = vpush %v294_v8 }
 0x27e   :  { %s387_s0 = spop %386 }
 0x27f   :  { %v284_v9 = vstv %s387_s0 }
 0x280   :  { %285 = vst [vmem:[%s520_s4] sm:$0xff] %v284_v9 }
 0x282   :  { %s389_s10 = spop %388 }
 0x283   :  { %v296_v10 = vstv %s389_s10 }
 0x284   :  { %297 = vst [vmem:[#allocation2] sm:$0xff] %v296_v10 }
 0x285   :  { %408 = shalt.err (!%p405_p4)
}
 0x286   :  { %309 = dma.vmem_to_hbm [thread:$0]  %s307_s7, 128, %s521_s5, [#allocation3]  }
 0x287   :  { %417 = dma.done.wait [#allocation3], 128  }
 0x288   :  { %418 = vsyncadd [#allocation3], 4294967168 }
 0x289   :  { %315 = vsyncpa [#allocation3], 1 }

// kernel: _lambda_.6
= control target key start
LH: loop header
LB: loop body
LE: loop exit
PB: predicated region body
PF: predicated region fallthrough
CT: control target
= control target key end

     0   :  { %v426_v2 = vmov 0.0   ;;  %vm427_vm0 = vmmov 0   ;;  %s547_s0 = inlined_call_operand.vmem [shape: f32[40,40], index: 0, kind: input, shape index: {}]   ;;  %s548_s1 = inlined_call_operand.vmem [shape: f32[48,48], index: 1, kind: input, shape index: {}]   ;;  %s549_s2 = inlined_call_operand.vmem [shape: f32[8,48], index: 2, kind: input, shape index: {}]   ;;  %s550_s3 = inlined_call_operand.vmem [shape: f32[8,48], index: 3, kind: input, shape index: {}]   ;;  %s551_s4 = inlined_call_operand.hbm [shape: f32[8,128], index: 4, kind: output, shape index: {0}]   ;;  %s552_s5 = inlined_call_operand.vmem [shape: f32[8,128], index: 5, kind: output, shape index: {1}]  }
   0x1   :  { %v20_v0 = vld [vmem:[%s549_s2] sm:$0xff]  ;;  %341 = vmatprep.subr.mxu0 %v426_v2  ;;  %351 = vmatprep.mubr.msk.f32.mxu0 %vm427_vm0, %v426_v2  ;;  %v141_v5 = vld [vmem:[%s548_s1 + $0x28] sm:$0xff]  ;;  %v139_v8 = vld [vmem:[%s548_s1 + $0x18] sm:$0xff] }
   0x2   :  { %v21_v1 = vld [vmem:[%s550_s3] sm:$0xff]  ;;  %366 = vmatprep.subr.mxu1 %v426_v2  ;;  %378 = vmatprep.mubr.msk.f32.mxu1 %vm427_vm0, %v426_v2  ;;  %v22_v7 = vmul.f32 %v20_v0, %v20_v0 }
   0x3   :  { %v24_v3 = vmul.f32 %v21_v1, %v20_v0  ;;  %v23_v4 = vmul.f32 %v21_v1, %v21_v1  ;;  %v140_v6 = vld [vmem:[%s548_s1 + $0x20] sm:$0xff]  ;;  %367 = vmatpush3.msra.mxu1 %v141_v5 }
   0x4   :  { %368 = vmatprep.subr.mxu1 %v426_v2 }
   0x5   :  { %342 = vmatpush3.msra.mxu0 %v24_v3 }
   0x6   :  { %343 = vmatprep.subr.mxu0 %v426_v2 }
   0x7   :  { %11 = vsyncpa [#allocation3], 0  ;;  %344 = vmatpush3.msra.mxu0 %v23_v4  ;;  %369 = vmatpush3.msra.mxu1 %v140_v6  ;;  %v138_v9 = vld [vmem:[%s548_s1 + $0x10] sm:$0xff]  ;;  %v137_v10 = vld [vmem:[%s548_s1 + $0x8] sm:$0xff]  ;;  %vm30_vm1 = vcmask 326656   ;;  %vm142_vm2 = vcmask 392192  }
   0x8   :  { %345 = vmatprep.subr.mxu0 %v426_v2  ;;  %370 = vmatprep.subr.mxu1 %v426_v2  ;;  %v25_v11 = vld [vmem:[%s547_s0] sm:$0xff]  ;;  %v26_v12 = vld [vmem:[%s547_s0 + $0x8] sm:$0xff]  ;;  %v27_v13 = vld [vmem:[%s547_s0 + $0x10] sm:$0xff] }
   0x9   :  { %346 = vmatpush3.msra.mxu0 %v22_v7  ;;  %371 = vmatpush3.msra.mxu1 %v139_v8  ;;  %v28_v14 = vld [vmem:[%s547_s0 + $0x18] sm:$0xff]  ;;  %v29_v15 = vld [vmem:[%s547_s0 + $0x20] sm:$0xff]  ;;  %s428_s0 = smov [#allocation2]  }
   0xa   :  { %347 = vmatprep.subr.mxu0 %v426_v2  ;;  %372 = vmatprep.subr.mxu1 %v426_v2  ;;  %v136_v16 = vld [vmem:[%s548_s1] sm:$0xff]  ;;  %s298_s1 = sshll.u32 %s428_s0, 4  ;;  %s299_s1 = int_to_ptr.vmem [resolvable:$true] %s298_s1 }
   0xb   :  { %348 = vmatpush3.msra.mxu0 %v21_v1  ;;  %373 = vmatpush3.msra.mxu1 %v138_v9  ;;  %s404_s18 = scalar_lea.vmem %s299_s1, 128  ;;  %p409_p1 = scmp.lt.s32.totalorder %s299_s1, %s299_s1 }
   0xc   :  { %349 = vmatprep.subr.mxu0 %v426_v2  ;;  %374 = vmatprep.subr.mxu1 %v426_v2  ;;  %p405_p0 = scmp.ne.s32.totalorder %s299_s1, %s404_s18  ;;  %p410_p2 = scmp.lt.s32.totalorder %s404_s18, %s404_s18 }
   0xd   :  { %350 = vmatpush3.msra.mxu0 %v20_v0  ;;  %375 = vmatpush3.msra.mxu1 %v137_v10 }
   0xe   :  { %352 = vmatmul.mubr.msk.f32.vlgmr.msra.gmra.mxu0 %vm30_vm1, %v25_v11  ;;  %376 = vmatprep.subr.mxu1 %v426_v2  ;;  %p411_p3 = por %p410_p2, %p409_p1 }
   0xf   :  { %354 = vmatprep.mubr.msk.f32.mxu0 %vm427_vm0, %v426_v2  ;;  %377 = vmatpush3.msra.mxu1 %v136_v16 }
  0x10   :  { %p412_p4 = pnand %p411_p3, %p405_p0 }
  0x12   :  { %355 = vmatmul.mubr.msk.f32.gmra.mxu0 %vm30_vm1, %v26_v12 }
  0x13   :  { %357 = vmatprep.mubr.msk.f32.mxu0 %vm427_vm0, %v426_v2 }
  0x16   :  { %358 = vmatmul.mubr.msk.f32.gmra.mxu0 %vm30_vm1, %v27_v13 }
  0x17   :  { %360 = vmatprep.mubr.msk.f32.mxu0 %vm427_vm0, %v426_v2 }
  0x1a   :  { %361 = vmatmul.mubr.msk.f32.gmra.mxu0 %vm30_vm1, %v28_v14 }
  0x1b   :  { %363 = vmatprep.mubr.msk.f32.mxu0 %vm427_vm0, %v426_v2 }
  0x1e   :  { %364 = vmatmul.mubr.msk.f32.gmra.mxu0 %vm30_vm1, %v29_v15 }
  0xce   :  { %v112_v17 = vpop.f32.mrf.mxu0 }
  0xcf   :  { %379 = vmatmul.mubr.msk.f32.vlgmr.msra.gmra.mxu1 %vm142_vm2, %v112_v17 }
  0xd0   :  { %v353_v18 = vpop.f32.mrf.mxu0  ;;  %381 = vmatprep.mubr.msk.f32.mxu1 %vm427_vm0, %v426_v2 }
  0xd2   :  { %v117_v19 = vpop.f32.mrf.mxu0 }
  0xd3   :  { %382 = vmatmul.mubr.msk.f32.gmra.mxu1 %vm142_vm2, %v117_v19 }
  0xd4   :  { %v356_v20 = vpop.f32.mrf.mxu0  ;;  %384 = vmatprep.mubr.msk.f32.mxu1 %vm427_vm0, %v426_v2 }
  0xd6   :  { %v122_v21 = vpop.f32.mrf.mxu0 }
  0xd7   :  { %385 = vmatmul.mubr.msk.f32.gmra.mxu1 %vm142_vm2, %v122_v21 }
  0xd8   :  { %v359_v22 = vpop.f32.mrf.mxu0  ;;  %387 = vmatprep.mubr.msk.f32.mxu1 %vm427_vm0, %v426_v2 }
  0xda   :  { %v127_v23 = vpop.f32.mrf.mxu0 }
  0xdb   :  { %388 = vmatmul.mubr.msk.f32.gmra.mxu1 %vm142_vm2, %v127_v23 }
  0xdc   :  { %v362_v24 = vpop.f32.mrf.mxu0  ;;  %390 = vmatprep.mubr.msk.f32.mxu1 %vm427_vm0, %v426_v2 }
  0xde   :  { %v132_v25 = vpop.f32.mrf.mxu0 }
  0xdf   :  { %391 = vmatmul.mubr.msk.f32.gmra.mxu1 %vm142_vm2, %v132_v25 }
  0xe0   :  { %v365_v26 = vpop.f32.mrf.mxu0 }
 0x18f   :  { %v224_v27 = vpop.f32.mrf.mxu1 }
 0x190   :  { %v248_v32 = vmul.f32 %v224_v27, %v224_v27  ;;  %v254_v47 = vmul.f32 2.0, %v224_v27 }
 0x191   :  { %v380_v28 = vpop.f32.mrf.mxu1 }
 0x193   :  { %v229_v29 = vpop.f32.mrf.mxu1 }
 0x194   :  { %v250_v30 = vmul.f32 %v229_v29, %v229_v29  ;;  %v252_v45 = vmul.f32 %v229_v29, %v224_v27  ;;  %v255_v48 = vmul.f32 %v254_v47, %v229_v29 }
 0x195   :  { %v383_v31 = vpop.f32.mrf.mxu1 }
 0x196   :  { %v259_v34 = vadd.f32 %v250_v30, %v248_v32  ;;  %v256_v51 = vadd.f32 0.0001, %v255_v48 }
 0x197   :  { %v234_v33 = vpop.f32.mrf.mxu1 }
 0x198   :  { %v249_v37 = vsub.f32 %v234_v33, %v248_v32  ;;  %v260_v39 = vadd.f32 0.0001, %v259_v34 }
 0x199   :  { %v386_v35 = vpop.f32.mrf.mxu1 }
 0x19a   :  { %400 = vrcp.f32 %v260_v39 }
 0x19b   :  { %v239_v36 = vpop.f32.mrf.mxu1 }
 0x19c   :  { %v251_v38 = vsub.f32 %v239_v36, %v250_v30 }
 0x19d   :  { %v389_v40 = vpop.f32.mrf.mxu1 }
 0x19e   :  { %v261_v41 = vadd.f32 %v251_v38, %v249_v37 }
 0x19f   :  { %v244_v42 = vpop.f32.mrf.mxu1 }
 0x1a0   :  { %v262_v43 = vadd.f32 0.0009, %v261_v41  ;;  %v253_v46 = vsub.f32 %v244_v42, %v252_v45 }
 0x1a1   :  { %v392_v44 = vpop.f32.mrf.mxu1 }
 0x1a2   :  { %402 = vrcp.f32 %v262_v43  ;;  %v257_v49 = vmul.f32 2.0, %v253_v46 }
 0x1a4   :  { %v258_v52 = vadd.f32 0.0009, %v257_v49 }
 0x1a7   :  { %v401_v50 = vpop.eup %400 }
 0x1a8   :  { %v264_v55 = vmul.f32 %v401_v50, %v256_v51 }
 0x1af   :  { %v403_v53 = vpop.eup %402 }
 0x1b0   :  { %v266_v54 = vmul.f32 %v403_v53, %v258_v52 }
 0x1b2   :  { %v267_v56 = vmul.f32 %v266_v54, %v264_v55  ;;  %v280_v58 = vsel %vm142_vm2, %v266_v54, 0.0 }
 0x1b4   :  { %v268_v57 = vsel %vm142_vm2, %v267_v56, 0.0 }
 0x1b5   :  { %269 = vadd.xlane.f32.xlu0 %v268_v57 }
 0x1b9   :  { %281 = vadd.xlane.f32.xlu0 %v280_v58 }
 0x23e   :  { %v270_v59 = vpop.xlane.xlu0 %269 }
 0x23f   :  { %v271_v60 = vrot.slane %v270_v59, 4 }
 0x241   :  { %v272_v61 = vadd.f32 %v271_v60, %v270_v59 }
 0x242   :  { %v282_v62 = vpop.xlane.xlu0 %281 }
 0x243   :  { %v273_v63 = vrot.slane %v272_v61, 2  ;;  %v283_v0 = vrot.slane %v282_v62, 4 }
 0x245   :  { %v284_v1 = vadd.f32 %v283_v0, %v282_v62  ;;  %v274_v2 = vadd.f32 %v273_v63, %v272_v61 }
 0x247   :  { %v285_v3 = vrot.slane %v284_v1, 2  ;;  %v275_v4 = vrot.slane %v274_v2, 1 }
 0x249   :  { %v286_v5 = vadd.f32 %v285_v3, %v284_v1  ;;  %v276_v6 = vadd.f32 %v275_v4, %v274_v2 }
 0x24b   :  { %393 = vpush %v276_v6  ;;  %v287_v7 = vrot.slane %v286_v5, 1 }
 0x24d   :  { %v288_v8 = vadd.f32 %v287_v7, %v286_v5 }
 0x24f   :  { %395 = vpush %v288_v8 }
 0x27c   :  { %s394_s17 = spop %393 }
 0x27d   :  { %v278_v9 = vstv %s394_s17 }
 0x27e   :  { %279 = vst [vmem:[#allocation2] sm:$0xff] %v278_v9 }
 0x27f   :  { %415 = shalt.err (!%p412_p4)
}
 0x280   :  { %301 = dma.vmem_to_hbm [thread:$0]  %s299_s1, 128, %s551_s4, [#allocation3]  }
 0x281   :  { %s396_s21 = spop %395 }
 0x282   :  { %v290_v10 = vstv %s396_s21 }
 0x283   :  { %291 = vst [vmem:[%s552_s5] sm:$0xff] %v290_v10 }
 0x284   :  { %424 = dma.done.wait [#allocation3], 128  }
 0x285   :  { %425 = vsyncadd [#allocation3], 4294967168 }
 0x286   :  { %309 = vsyncpa [#allocation3], 1 }

// kernel: _lambda_.8
= control target key start
LH: loop header
LB: loop body
LE: loop exit
PB: predicated region body
PF: predicated region fallthrough
CT: control target
= control target key end

     0   :  { %v423_v2 = vmov 0.0   ;;  %vm424_vm0 = vmmov 0   ;;  %vm154_vm1 = vcmask 1043456   ;;  %s524_s0 = inlined_call_operand.vmem [shape: f32[40,40], index: 0, kind: input, shape index: {}]   ;;  %s525_s1 = inlined_call_operand.vmem [shape: f32[12,12], index: 1, kind: input, shape index: {}]   ;;  %s526_s2 = inlined_call_operand.vmem [shape: f32[8,12], index: 2, kind: input, shape index: {}]   ;;  %s527_s3 = inlined_call_operand.vmem [shape: f32[8,12], index: 3, kind: input, shape index: {}]   ;;  %s528_s4 = inlined_call_operand.hbm [shape: f32[8,128], index: 4, kind: output, shape index: {0}]   ;;  %s529_s5 = inlined_call_operand.vmem [shape: f32[8,128], index: 5, kind: output, shape index: {1}]  }
   0x1   :  { %v20_v0 = vld [vmem:[%s526_s2] sm:$0xff]  ;;  %346 = vmatprep.subr.mxu0 %v423_v2  ;;  %356 = vmatprep.mubr.msk.f32.mxu0 %vm424_vm0, %v423_v2  ;;  %v137_v5 = vld [vmem:[%s525_s1 + $0x8] sm:$0xf] }
   0x2   :  { %v21_v1 = vld [vmem:[%s527_s3] sm:$0xff]  ;;  %371 = vmatprep.subr.mxu1 %v423_v2  ;;  %375 = vmatprep.mubr.msk.f32.mxu1 %vm424_vm0, %v423_v2 }
   0x3   :  { %v24_v3 = vmul.f32 %v21_v1, %v20_v0  ;;  %v23_v4 = vmul.f32 %v21_v1, %v21_v1 }
   0x4   :  { %11 = vsyncpa [#allocation3], 0  ;;  %v22_v6 = vmul.f32 %v20_v0, %v20_v0  ;;  %372 = vmatpush3.msk.msra.mxu1 %vm154_vm1, %v137_v5  ;;  %v25_v7 = vld [vmem:[%s524_s0] sm:$0xff]  ;;  %vm30_vm2 = vcmask 326656   ;;  %v26_v8 = vld [vmem:[%s524_s0 + $0x8] sm:$0xff]  ;;  %vm138_vm3 = vcmask 97280   ;;  %v268_v44 = vlaneseq }
   0x5   :  { %347 = vmatpush3.msra.mxu0 %v24_v3  ;;  %373 = vmatprep.subr.mxu1 %v423_v2  ;;  %v27_v9 = vld [vmem:[%s524_s0 + $0x10] sm:$0xff]  ;;  %v28_v10 = vld [vmem:[%s524_s0 + $0x18] sm:$0xff]  ;;  %v29_v11 = vld [vmem:[%s524_s0 + $0x20] sm:$0xff]  ;;  %s425_s0 = smov [#allocation2]  }
   0x6   :  { %348 = vmatprep.subr.mxu0 %v423_v2  ;;  %v136_v12 = vld [vmem:[%s525_s1] sm:$0xff]  ;;  %v269_v47 = vshrl.u32 %v268_v44, 7  ;;  %s305_s1 = sshll.u32 %s425_s0, 4  ;;  %s306_s1 = int_to_ptr.vmem [resolvable:$true] %s305_s1 }
   0x7   :  { %349 = vmatpush3.msra.mxu0 %v23_v4  ;;  %374 = vmatpush3.msra.mxu1 %v136_v12  ;;  %s401_s10 = scalar_lea.vmem %s306_s1, 128  ;;  %p406_p1 = scmp.lt.s32.totalorder %s306_s1, %s306_s1 }
   0x8   :  { %350 = vmatprep.subr.mxu0 %v423_v2  ;;  %vm270_vm4 = vcmp.lt.s32.totalorder %v269_v47, 2  ;;  %p402_p0 = scmp.ne.s32.totalorder %s306_s1, %s401_s10  ;;  %p407_p2 = scmp.lt.s32.totalorder %s401_s10, %s401_s10 }
   0x9   :  { %351 = vmatpush3.msra.mxu0 %v22_v6  ;;  %v328_v55 = vsel %vm270_vm4, 1.0, %v423_v2 }
   0xa   :  { %352 = vmatprep.subr.mxu0 %v423_v2  ;;  %p408_p3 = por %p407_p2, %p406_p1 }
   0xb   :  { %353 = vmatpush3.msra.mxu0 %v21_v1 }
   0xc   :  { %354 = vmatprep.subr.mxu0 %v423_v2  ;;  %p409_p4 = pnand %p408_p3, %p402_p0 }
   0xd   :  { %355 = vmatpush3.msra.mxu0 %v20_v0 }
   0xe   :  { %357 = vmatmul.mubr.msk.f32.vlgmr.msra.gmra.mxu0 %vm30_vm2, %v25_v7 }
   0xf   :  { %359 = vmatprep.mubr.msk.f32.mxu0 %vm424_vm0, %v423_v2 }
  0x12   :  { %360 = vmatmul.mubr.msk.f32.gmra.mxu0 %vm30_vm2, %v26_v8 }
  0x13   :  { %362 = vmatprep.mubr.msk.f32.mxu0 %vm424_vm0, %v423_v2 }
  0x16   :  { %363 = vmatmul.mubr.msk.f32.gmra.mxu0 %vm30_vm2, %v27_v9 }
  0x17   :  { %365 = vmatprep.mubr.msk.f32.mxu0 %vm424_vm0, %v423_v2 }
  0x1a   :  { %366 = vmatmul.mubr.msk.f32.gmra.mxu0 %vm30_vm2, %v28_v10 }
  0x1b   :  { %368 = vmatprep.mubr.msk.f32.mxu0 %vm424_vm0, %v423_v2 }
  0x1e   :  { %369 = vmatmul.mubr.msk.f32.gmra.mxu0 %vm30_vm2, %v29_v11 }
  0xce   :  { %v112_v13 = vpop.f32.mrf.mxu0 }
  0xcf   :  { %376 = vmatmul.mubr.msk.f32.vlgmr.msra.gmra.mxu1 %vm138_vm3, %v112_v13 }
  0xd0   :  { %v358_v14 = vpop.f32.mrf.mxu0  ;;  %378 = vmatprep.mubr.msk.f32.mxu1 %vm424_vm0, %v423_v2 }
  0xd2   :  { %v117_v15 = vpop.f32.mrf.mxu0 }
  0xd3   :  { %379 = vmatmul.mubr.msk.f32.gmra.mxu1 %vm138_vm3, %v117_v15 }
  0xd4   :  { %v361_v16 = vpop.f32.mrf.mxu0  ;;  %381 = vmatprep.mubr.msk.f32.mxu1 %vm424_vm0, %v423_v2 }
  0xd6   :  { %v122_v17 = vpop.f32.mrf.mxu0 }
  0xd7   :  { %382 = vmatmul.mubr.msk.f32.gmra.mxu1 %vm138_vm3, %v122_v17 }
  0xd8   :  { %v364_v18 = vpop.f32.mrf.mxu0  ;;  %384 = vmatprep.mubr.msk.f32.mxu1 %vm424_vm0, %v423_v2 }
  0xda   :  { %v127_v19 = vpop.f32.mrf.mxu0 }
  0xdb   :  { %385 = vmatmul.mubr.msk.f32.gmra.mxu1 %vm138_vm3, %v127_v19 }
  0xdc   :  { %v367_v20 = vpop.f32.mrf.mxu0  ;;  %387 = vmatprep.mubr.msk.f32.mxu1 %vm424_vm0, %v423_v2 }
  0xde   :  { %v132_v21 = vpop.f32.mrf.mxu0 }
  0xdf   :  { %388 = vmatmul.mubr.msk.f32.gmra.mxu1 %vm138_vm3, %v132_v21 }
  0xe0   :  { %v370_v22 = vpop.f32.mrf.mxu0 }
 0x18f   :  { %v224_v23 = vpop.f32.mrf.mxu1 }
 0x190   :  { %v248_v28 = vmul.f32 %v224_v23, %v224_v23  ;;  %v254_v43 = vmul.f32 2.0, %v224_v23 }
 0x191   :  { %v377_v24 = vpop.f32.mrf.mxu1 }
 0x193   :  { %v229_v25 = vpop.f32.mrf.mxu1 }
 0x194   :  { %v250_v26 = vmul.f32 %v229_v25, %v229_v25  ;;  %v252_v41 = vmul.f32 %v229_v25, %v224_v23  ;;  %v255_v45 = vmul.f32 %v254_v43, %v229_v25 }
 0x195   :  { %v380_v27 = vpop.f32.mrf.mxu1 }
 0x196   :  { %v259_v30 = vadd.f32 %v250_v26, %v248_v28  ;;  %v256_v49 = vadd.f32 0.0001, %v255_v45 }
 0x197   :  { %v234_v29 = vpop.f32.mrf.mxu1 }
 0x198   :  { %v249_v33 = vsub.f32 %v234_v29, %v248_v28  ;;  %v260_v35 = vadd.f32 0.0001, %v259_v30 }
 0x199   :  { %v383_v31 = vpop.f32.mrf.mxu1 }
 0x19a   :  { %397 = vrcp.f32 %v260_v35 }
 0x19b   :  { %v239_v32 = vpop.f32.mrf.mxu1 }
 0x19c   :  { %v251_v34 = vsub.f32 %v239_v32, %v250_v26 }
 0x19d   :  { %v386_v36 = vpop.f32.mrf.mxu1 }
 0x19e   :  { %v261_v37 = vadd.f32 %v251_v34, %v249_v33 }
 0x19f   :  { %v244_v38 = vpop.f32.mrf.mxu1 }
 0x1a0   :  { %v262_v39 = vadd.f32 0.0009, %v261_v37  ;;  %v253_v42 = vsub.f32 %v244_v38, %v252_v41 }
 0x1a1   :  { %v389_v40 = vpop.f32.mrf.mxu1 }
 0x1a2   :  { %399 = vrcp.f32 %v262_v39  ;;  %v257_v46 = vmul.f32 2.0, %v253_v42 }
 0x1a4   :  { %v258_v50 = vadd.f32 0.0009, %v257_v46 }
 0x1a7   :  { %v398_v48 = vpop.eup %397 }
 0x1a8   :  { %v264_v53 = vmul.f32 %v398_v48, %v256_v49 }
 0x1af   :  { %v400_v51 = vpop.eup %399 }
 0x1b0   :  { %v266_v52 = vmul.f32 %v400_v51, %v258_v50 }
 0x1b2   :  { %v267_v54 = vmul.f32 %v266_v52, %v264_v53  ;;  %v274_v58 = vmul.f32 %v328_v55, %v266_v52 }
 0x1b4   :  { %v273_v56 = vmul.f32 %v328_v55, %v267_v54  ;;  %v287_v59 = vsel %vm138_vm3, %v274_v58, 0.0 }
 0x1b6   :  { %v275_v57 = vsel %vm138_vm3, %v273_v56, 0.0 }
 0x1b7   :  { %276 = vadd.xlane.f32.xlu0 %v275_v57 }
 0x1bb   :  { %288 = vadd.xlane.f32.xlu0 %v287_v59 }
 0x240   :  { %v277_v60 = vpop.xlane.xlu0 %276 }
 0x241   :  { %v278_v61 = vrot.slane %v277_v60, 4 }
 0x243   :  { %v279_v62 = vadd.f32 %v278_v61, %v277_v60 }
 0x244   :  { %v289_v63 = vpop.xlane.xlu0 %288 }
 0x245   :  { %v280_v0 = vrot.slane %v279_v62, 2  ;;  %v290_v1 = vrot.slane %v289_v63, 4 }
 0x247   :  { %v291_v3 = vadd.f32 %v290_v1, %v289_v63  ;;  %v281_v4 = vadd.f32 %v280_v0, %v279_v62 }
 0x249   :  { %v292_v5 = vrot.slane %v291_v3, 2  ;;  %v282_v6 = vrot.slane %v281_v4, 1 }
 0x24b   :  { %v293_v7 = vadd.f32 %v292_v5, %v291_v3  ;;  %v283_v2 = vadd.f32 %v282_v6, %v281_v4 }
 0x24d   :  { %390 = vpush %v283_v2  ;;  %v294_v8 = vrot.slane %v293_v7, 1 }
 0x24f   :  { %v295_v9 = vadd.f32 %v294_v8, %v293_v7 }
 0x251   :  { %392 = vpush %v295_v9 }
 0x27e   :  { %s391_s9 = spop %390 }
 0x27f   :  { %v285_v10 = vstv %s391_s9 }
 0x280   :  { %286 = vst [vmem:[#allocation2] sm:$0xff] %v285_v10 }
 0x281   :  { %412 = shalt.err (!%p409_p4)
}
 0x282   :  { %308 = dma.vmem_to_hbm [thread:$0]  %s306_s1, 128, %s528_s4, [#allocation3]  }
 0x283   :  { %s393_s13 = spop %392 }
 0x284   :  { %v297_v11 = vstv %s393_s13 }
 0x285   :  { %298 = vst [vmem:[%s529_s5] sm:$0xff] %v297_v11 }
 0x286   :  { %421 = dma.done.wait [#allocation3], 128  }
 0x287   :  { %422 = vsyncadd [#allocation3], 4294967168 }
 0x288   :  { %316 = vsyncpa [#allocation3], 1 }

// kernel: _lambda_.7
= control target key start
LH: loop header
LB: loop body
LE: loop exit
PB: predicated region body
PF: predicated region fallthrough
CT: control target
= control target key end

     0   :  { %v422_v2 = vmov 0.0   ;;  %vm423_vm0 = vmmov 0   ;;  %s527_s0 = inlined_call_operand.vmem [shape: f32[40,40], index: 0, kind: input, shape index: {}]   ;;  %s528_s1 = inlined_call_operand.vmem [shape: f32[24,24], index: 1, kind: input, shape index: {}]   ;;  %s529_s2 = inlined_call_operand.vmem [shape: f32[8,24], index: 2, kind: input, shape index: {}]   ;;  %s530_s3 = inlined_call_operand.vmem [shape: f32[8,24], index: 3, kind: input, shape index: {}]   ;;  %s531_s4 = inlined_call_operand.hbm [shape: f32[8,128], index: 4, kind: output, shape index: {0}]   ;;  %s532_s5 = inlined_call_operand.vmem [shape: f32[8,128], index: 5, kind: output, shape index: {1}]  }
   0x1   :  { %v20_v0 = vld [vmem:[%s529_s2] sm:$0xff]  ;;  %343 = vmatprep.subr.mxu0 %v422_v2  ;;  %353 = vmatprep.mubr.msk.f32.mxu0 %vm423_vm0, %v422_v2  ;;  %v138_v5 = vld [vmem:[%s528_s1 + $0x10] sm:$0xff]  ;;  %v137_v6 = vld [vmem:[%s528_s1 + $0x8] sm:$0xff] }
   0x2   :  { %v21_v1 = vld [vmem:[%s530_s3] sm:$0xff]  ;;  %368 = vmatprep.subr.mxu1 %v422_v2  ;;  %374 = vmatprep.mubr.msk.f32.mxu1 %vm423_vm0, %v422_v2  ;;  %v22_v7 = vmul.f32 %v20_v0, %v20_v0 }
   0x3   :  { %v24_v3 = vmul.f32 %v21_v1, %v20_v0  ;;  %v23_v4 = vmul.f32 %v21_v1, %v21_v1  ;;  %369 = vmatpush3.msra.mxu1 %v138_v5 }
   0x5   :  { %344 = vmatpush3.msra.mxu0 %v24_v3 }
   0x6   :  { %11 = vsyncpa [#allocation3], 0  ;;  %345 = vmatprep.subr.mxu0 %v422_v2  ;;  %370 = vmatprep.subr.mxu1 %v422_v2  ;;  %v25_v8 = vld [vmem:[%s527_s0] sm:$0xff]  ;;  %vm30_vm1 = vcmask 326656   ;;  %v26_v9 = vld [vmem:[%s527_s0 + $0x8] sm:$0xff]  ;;  %vm139_vm2 = vcmask 195584   ;;  %v265_v45 = vlaneseq }
   0x7   :  { %346 = vmatpush3.msra.mxu0 %v23_v4  ;;  %371 = vmatpush3.msra.mxu1 %v137_v6  ;;  %v27_v10 = vld [vmem:[%s527_s0 + $0x10] sm:$0xff]  ;;  %v28_v11 = vld [vmem:[%s527_s0 + $0x18] sm:$0xff]  ;;  %v29_v12 = vld [vmem:[%s527_s0 + $0x20] sm:$0xff]  ;;  %s424_s0 = smov [#allocation2]  }
   0x8   :  { %347 = vmatprep.subr.mxu0 %v422_v2  ;;  %372 = vmatprep.subr.mxu1 %v422_v2  ;;  %v136_v13 = vld [vmem:[%s528_s1] sm:$0xff]  ;;  %v266_v48 = vshrl.u32 %v265_v45, 7  ;;  %s302_s1 = sshll.u32 %s424_s0, 4  ;;  %s303_s1 = int_to_ptr.vmem [resolvable:$true] %s302_s1 }
   0x9   :  { %348 = vmatpush3.msra.mxu0 %v22_v7  ;;  %373 = vmatpush3.msra.mxu1 %v136_v13  ;;  %s400_s12 = scalar_lea.vmem %s303_s1, 128  ;;  %p405_p1 = scmp.lt.s32.totalorder %s303_s1, %s303_s1 }
   0xa   :  { %349 = vmatprep.subr.mxu0 %v422_v2  ;;  %vm267_vm3 = vcmp.lt.s32.totalorder %v266_v48, 4  ;;  %p401_p0 = scmp.ne.s32.totalorder %s303_s1, %s400_s12  ;;  %p406_p2 = scmp.lt.s32.totalorder %s400_s12, %s400_s12 }
   0xb   :  { %350 = vmatpush3.msra.mxu0 %v21_v1  ;;  %v324_v56 = vsel %vm267_vm3, 1.0, %v422_v2 }
   0xc   :  { %351 = vmatprep.subr.mxu0 %v422_v2  ;;  %p407_p3 = por %p406_p2, %p405_p1 }
   0xd   :  { %352 = vmatpush3.msra.mxu0 %v20_v0 }
   0xe   :  { %354 = vmatmul.mubr.msk.f32.vlgmr.msra.gmra.mxu0 %vm30_vm1, %v25_v8  ;;  %p408_p4 = pnand %p407_p3, %p401_p0 }
   0xf   :  { %356 = vmatprep.mubr.msk.f32.mxu0 %vm423_vm0, %v422_v2 }
  0x12   :  { %357 = vmatmul.mubr.msk.f32.gmra.mxu0 %vm30_vm1, %v26_v9 }
  0x13   :  { %359 = vmatprep.mubr.msk.f32.mxu0 %vm423_vm0, %v422_v2 }
  0x16   :  { %360 = vmatmul.mubr.msk.f32.gmra.mxu0 %vm30_vm1, %v27_v10 }
  0x17   :  { %362 = vmatprep.mubr.msk.f32.mxu0 %vm423_vm0, %v422_v2 }
  0x1a   :  { %363 = vmatmul.mubr.msk.f32.gmra.mxu0 %vm30_vm1, %v28_v11 }
  0x1b   :  { %365 = vmatprep.mubr.msk.f32.mxu0 %vm423_vm0, %v422_v2 }
  0x1e   :  { %366 = vmatmul.mubr.msk.f32.gmra.mxu0 %vm30_vm1, %v29_v12 }
  0xce   :  { %v112_v14 = vpop.f32.mrf.mxu0 }
  0xcf   :  { %375 = vmatmul.mubr.msk.f32.vlgmr.msra.gmra.mxu1 %vm139_vm2, %v112_v14 }
  0xd0   :  { %v355_v15 = vpop.f32.mrf.mxu0  ;;  %377 = vmatprep.mubr.msk.f32.mxu1 %vm423_vm0, %v422_v2 }
  0xd2   :  { %v117_v16 = vpop.f32.mrf.mxu0 }
  0xd3   :  { %378 = vmatmul.mubr.msk.f32.gmra.mxu1 %vm139_vm2, %v117_v16 }
  0xd4   :  { %v358_v17 = vpop.f32.mrf.mxu0  ;;  %380 = vmatprep.mubr.msk.f32.mxu1 %vm423_vm0, %v422_v2 }
  0xd6   :  { %v122_v18 = vpop.f32.mrf.mxu0 }
  0xd7   :  { %381 = vmatmul.mubr.msk.f32.gmra.mxu1 %vm139_vm2, %v122_v18 }
  0xd8   :  { %v361_v19 = vpop.f32.mrf.mxu0  ;;  %383 = vmatprep.mubr.msk.f32.mxu1 %vm423_vm0, %v422_v2 }
  0xda   :  { %v127_v20 = vpop.f32.mrf.mxu0 }
  0xdb   :  { %384 = vmatmul.mubr.msk.f32.gmra.mxu1 %vm139_vm2, %v127_v20 }
  0xdc   :  { %v364_v21 = vpop.f32.mrf.mxu0  ;;  %386 = vmatprep.mubr.msk.f32.mxu1 %vm423_vm0, %v422_v2 }
  0xde   :  { %v132_v22 = vpop.f32.mrf.mxu0 }
  0xdf   :  { %387 = vmatmul.mubr.msk.f32.gmra.mxu1 %vm139_vm2, %v132_v22 }
  0xe0   :  { %v367_v23 = vpop.f32.mrf.mxu0 }
 0x18f   :  { %v221_v24 = vpop.f32.mrf.mxu1 }
 0x190   :  { %v245_v29 = vmul.f32 %v221_v24, %v221_v24  ;;  %v251_v44 = vmul.f32 2.0, %v221_v24 }
 0x191   :  { %v376_v25 = vpop.f32.mrf.mxu1 }
 0x193   :  { %v226_v26 = vpop.f32.mrf.mxu1 }
 0x194   :  { %v247_v27 = vmul.f32 %v226_v26, %v226_v26  ;;  %v249_v42 = vmul.f32 %v226_v26, %v221_v24  ;;  %v252_v46 = vmul.f32 %v251_v44, %v226_v26 }
 0x195   :  { %v379_v28 = vpop.f32.mrf.mxu1 }
 0x196   :  { %v256_v31 = vadd.f32 %v247_v27, %v245_v29  ;;  %v253_v50 = vadd.f32 0.0001, %v252_v46 }
 0x197   :  { %v231_v30 = vpop.f32.mrf.mxu1 }
 0x198   :  { %v246_v34 = vsub.f32 %v231_v30, %v245_v29  ;;  %v257_v36 = vadd.f32 0.0001, %v256_v31 }
 0x199   :  { %v382_v32 = vpop.f32.mrf.mxu1 }
 0x19a   :  { %396 = vrcp.f32 %v257_v36 }
 0x19b   :  { %v236_v33 = vpop.f32.mrf.mxu1 }
 0x19c   :  { %v248_v35 = vsub.f32 %v236_v33, %v247_v27 }
 0x19d   :  { %v385_v37 = vpop.f32.mrf.mxu1 }
 0x19e   :  { %v258_v38 = vadd.f32 %v248_v35, %v246_v34 }
 0x19f   :  { %v241_v39 = vpop.f32.mrf.mxu1 }
 0x1a0   :  { %v259_v40 = vadd.f32 0.0009, %v258_v38  ;;  %v250_v43 = vsub.f32 %v241_v39, %v249_v42 }
 0x1a1   :  { %v388_v41 = vpop.f32.mrf.mxu1 }
 0x1a2   :  { %398 = vrcp.f32 %v259_v40  ;;  %v254_v47 = vmul.f32 2.0, %v250_v43 }
 0x1a4   :  { %v255_v51 = vadd.f32 0.0009, %v254_v47 }
 0x1a7   :  { %v397_v49 = vpop.eup %396 }
 0x1a8   :  { %v261_v54 = vmul.f32 %v397_v49, %v253_v50 }
 0x1af   :  { %v399_v52 = vpop.eup %398 }
 0x1b0   :  { %v263_v53 = vmul.f32 %v399_v52, %v255_v51 }
 0x1b2   :  { %v264_v55 = vmul.f32 %v263_v53, %v261_v54  ;;  %v271_v59 = vmul.f32 %v324_v56, %v263_v53 }
 0x1b4   :  { %v270_v57 = vmul.f32 %v324_v56, %v264_v55  ;;  %v284_v60 = vsel %vm139_vm2, %v271_v59, 0.0 }
 0x1b6   :  { %v272_v58 = vsel %vm139_vm2, %v270_v57, 0.0 }
 0x1b7   :  { %273 = vadd.xlane.f32.xlu0 %v272_v58 }
 0x1bb   :  { %285 = vadd.xlane.f32.xlu0 %v284_v60 }
 0x240   :  { %v274_v61 = vpop.xlane.xlu0 %273 }
 0x241   :  { %v275_v62 = vrot.slane %v274_v61, 4 }
 0x243   :  { %v276_v63 = vadd.f32 %v275_v62, %v274_v61 }
 0x244   :  { %v286_v0 = vpop.xlane.xlu0 %285 }
 0x245   :  { %v277_v1 = vrot.slane %v276_v63, 2  ;;  %v287_v3 = vrot.slane %v286_v0, 4 }
 0x247   :  { %v288_v4 = vadd.f32 %v287_v3, %v286_v0  ;;  %v278_v5 = vadd.f32 %v277_v1, %v276_v63 }
 0x249   :  { %v289_v6 = vrot.slane %v288_v4, 2  ;;  %v279_v7 = vrot.slane %v278_v5, 1 }
 0x24b   :  { %v290_v8 = vadd.f32 %v289_v6, %v288_v4  ;;  %v280_v2 = vadd.f32 %v279_v7, %v278_v5 }
 0x24d   :  { %389 = vpush %v280_v2  ;;  %v291_v9 = vrot.slane %v290_v8, 1 }
 0x24f   :  { %v292_v10 = vadd.f32 %v291_v9, %v290_v8 }
 0x251   :  { %391 = vpush %v292_v10 }
 0x27e   :  { %s390_s11 = spop %389 }
 0x27f   :  { %v282_v11 = vstv %s390_s11 }
 0x280   :  { %283 = vst [vmem:[#allocation2] sm:$0xff] %v282_v11 }
 0x281   :  { %411 = shalt.err (!%p408_p4)
}
 0x282   :  { %305 = dma.vmem_to_hbm [thread:$0]  %s303_s1, 128, %s531_s4, [#allocation3]  }
 0x283   :  { %s392_s15 = spop %391 }
 0x284   :  { %v294_v12 = vstv %s392_s15 }
 0x285   :  { %295 = vst [vmem:[%s532_s5] sm:$0xff] %v294_v12 }
 0x286   :  { %420 = dma.done.wait [#allocation3], 128  }
 0x287   :  { %421 = vsyncadd [#allocation3], 4294967168 }
 0x288   :  { %313 = vsyncpa [#allocation3], 1 }

</bundles_post_ra>
